<compile_context>
chip_gen: v6e
topology: v6e:2x2x1
jax: 0.10.0
libtpu: 0.0.40
codegen_flags: <defaults>
</compile_context>

<pallas_src>
import functools

import jax
import jax.numpy as jnp
from jax import lax
from jax.experimental import pallas as pl
from jax.experimental.pallas import tpu as pltpu

# Constants from the PyTorch module.
TIME_WINDOW = 5
THRESH = 0.5
DECAY = 0.25
BN_EPS = 1e-5
LANE = 128
VMEM_LIMIT = 32 * 1024 * 1024   # <= scoped VMEM on every generation (incl. v7x)


def _ceil_to(x, m):
    return ((x + m - 1) // m) * m


def _pick_tile(n, unit, bytes_per_unit, min_steps=4, max_bytes=4 * 1024 * 1024):
    """Largest tile (multiple of `unit`, dividing n) whose grid is even with >=
    min_steps steps and whose per-block bytes stay under max_bytes; falls back
    to `unit` (never to a monolithic grid=1 block)."""
    assert n % unit == 0, (n, unit)
    best, t = unit, unit
    while t <= n:
        if n % t == 0 and t * bytes_per_unit <= max_bytes:
            steps = n // t
            if steps >= min_steps and steps % 2 == 0:
                best = t
        t += unit
    return best


# ---------------------------------------------------------------- Pallas kernels

def _mem_update_kernel(x_ref, s_ref, b_ref, o_ref):
    """Spiking membrane update with a folded-BN affine: cur_t = x_t*scale + bias.

    x_ref: (T, tile_r, L) f32, s_ref/b_ref: (1, L) f32, o_ref: (T, tile_r, L) bf16,
    where L = W*C (lane-dense packed channels-last).
    """
    scale = s_ref[...]
    bias = b_ref[...]
    mem = x_ref[0] * scale + bias
    spike = (mem > THRESH).astype(jnp.float32)
    o_ref[0] = spike.astype(o_ref.dtype)
    for t in range(1, TIME_WINDOW):          # static unroll, T = 5
        cur = x_ref[t] * scale + bias
        mem = mem * DECAY * (1.0 - spike) + cur
        spike = (mem > THRESH).astype(jnp.float32)
        o_ref[t] = spike.astype(o_ref.dtype)


def _conv_kernel(x_ref, w_ref, y_ref, ps_ref, pq_ref, xp_ref, *, k, pad, h, hpad):
    """One image of a stride-1 Snn_Conv2d in packed layout, as k banded matmuls.

    x_ref : (1, H, W*Cin)   bf16  packed input image (native channels, no padding)
    w_ref : (k, KL, W*Cout) bf16  banded weights, KL = W*Cin rounded up to 128
    y_ref : (1, H, W*Cout)  f32   packed output image
    ps_ref/pq_ref: (1, 1, W*Cout) per-lane sum / centred sum-of-squares partials
    xp_ref: (HPAD, KL) f32 scratch: rows [0,H) hold data, rows [H,HPAD) stay zero
            so the dy row shift can be realised as a circular pltpu.roll.
    """
    lin = x_ref.shape[2]
    # Zero every step: padding rows/lanes must be 0 and the scratch is per-core
    # (cannot rely on program_id==0 under "parallel" megacore sharding).
    xp_ref[...] = jnp.zeros_like(xp_ref)
    xp_ref[0:h, 0:lin] = x_ref[0].astype(jnp.float32)
    xp = xp_ref[...]

    acc = None
    for dy in range(k):                      # static unroll, k = 1 or 3
        shift = (pad - dy) % hpad
        a = xp if shift == 0 else pltpu.roll(xp, shift=shift, axis=0)
        a = a[0:h, :].astype(jnp.bfloat16)   # aligned slice (offset 0, H rows)
        d = jnp.dot(a, w_ref[dy], preferred_element_type=jnp.float32)
        acc = d if acc is None else acc + d

    y_ref[0] = acc
    # Per-lane BN partials (one group = the H rows of this image at one (x, c)
    # lane).  Centred sum-of-squares avoids the E[x^2]-E[x]^2 cancellation.
    s = jnp.sum(acc, axis=0, keepdims=True)
    mu = s * (1.0 / h)
    d0 = acc - mu
    ps_ref[0] = s
    pq_ref[0] = jnp.sum(d0 * d0, axis=0, keepdims=True)


def _affine_add_kernel(r_ref, sc_ref, s2_ref, b2_ref, ss_ref, bs_ref, o_ref):
    """out = bn2(residual) + bn_sc(shortcut), both BNs folded to scale/bias."""
    o_ref[...] = (r_ref[...] * s2_ref[...] + b2_ref[...]
                  + sc_ref[...] * ss_ref[...] + bs_ref[...])


# ---------------------------------------------------------------- wrappers

def mem_update_affine(x, scale_c, bias_c, w):
    """x: (T, R, W*C) f32 -> 0/1 spikes (T, R, W*C) bf16 with y = x*scale + bias folded."""
    t, r, l = x.shape
    c = l // w
    assert t == TIME_WINDOW and r % 8 == 0 and l == w * c
    assert scale_c.shape == (c,) and bias_c.shape == (c,)
    tile_r = _pick_tile(r, 8, bytes_per_unit=t * l * 6)          # f32 in + bf16 out
    s = jnp.tile(scale_c.astype(jnp.float32), w).reshape(1, l)   # per-channel -> per-lane
    b = jnp.tile(bias_c.astype(jnp.float32), w).reshape(1, l)
    return pl.pallas_call(
        _mem_update_kernel,
        out_shape=jax.ShapeDtypeStruct((t, r, l), jnp.bfloat16),
        grid=(r // tile_r,),
        in_specs=[pl.BlockSpec((t, tile_r, l), lambda i: (0, i, 0)),
                  pl.BlockSpec((1, l), lambda i: (0, 0)),
                  pl.BlockSpec((1, l), lambda i: (0, 0))],
        out_specs=pl.BlockSpec((t, tile_r, l), lambda i: (0, i, 0)),
        compiler_params=pltpu.CompilerParams(
            dimension_semantics=("parallel",), vmem_limit_bytes=VMEM_LIMIT),
    )(x, s, b)


def _band_weight(weight, k, pad, w, kl):
    """(Cout, Cin, k, k) OIHW weights -> (k, KL, W*Cout) bf16 banded matrices:
    band[dy][x_in*Cin + ci, x*Cout + co] = weight[co, ci, dy, dx] where x_in = x+dx-pad."""
    cout, cin = weight.shape[0], weight.shape[1]
    wt = jnp.transpose(weight, (2, 3, 1, 0)).astype(jnp.float32)    # (k, k, cin, cout)
    bands = []
    for dy in range(k):
        acc = jnp.zeros((w, cin, w, cout), jnp.float32)
        for dx in range(k):
            sel = jnp.eye(w, w, k=-(dx - pad), dtype=jnp.float32)   # sel[x+dx-pad, x] = 1
            acc = acc + sel[:, None, :, None] * wt[dy, dx][None, :, None, :]
        band = acc.reshape(w * cin, w * cout)
        band = jnp.pad(band, ((0, kl - w * cin), (0, 0)))
        bands.append(band)
    return jnp.stack(bands).astype(jnp.bfloat16)


def snn_conv2d_packed(x_packed, weight, k, pad, h, w):
    """Stride-1 Snn_Conv2d (bias=False) on packed (M, H, W*Cin) bf16 input with
    fused BN-stat partials.  Returns y (M, H, W*Cout) f32, per-lane partial sums
    (n_blk, 1, W*Cout), centred sumsq partials (same shape), and the group size."""
    m_total = x_packed.shape[0]
    cout, cin = weight.shape[0], weight.shape[1]
    assert weight.shape[2] == k and x_packed.shape[1] == h
    assert x_packed.shape[2] == w * cin and w % 8 == 0 and h % 8 == 0
    kl = _ceil_to(w * cin, LANE)
    lout = w * cout
    hpad = _ceil_to(h + 2 * pad, 8)
    wb = _band_weight(weight, k, pad, w, kl)

    # One image per grid step: long, even grid for megacore and tens-of-KB VMEM
    # per step.  TODO(synk): also tile H for large images so blocks stay under
    # the per-generation VMEM budget.
    m_tile = 1
    n_blk = m_total // m_tile
    kern = functools.partial(_conv_kernel, k=k, pad=pad, h=h, hpad=hpad)
    y, ps, pq = pl.pallas_call(
        kern,
        out_shape=(jax.ShapeDtypeStruct((m_total, h, lout), jnp.float32),
                   jax.ShapeDtypeStruct((n_blk, 1, lout), jnp.float32),
                   jax.ShapeDtypeStruct((n_blk, 1, lout), jnp.float32)),
        grid=(n_blk,),
        in_specs=[pl.BlockSpec((m_tile, h, w * cin), lambda i: (i, 0, 0)),
                  pl.BlockSpec((k, kl, lout), lambda i: (0, 0, 0))],
        out_specs=(pl.BlockSpec((m_tile, h, lout), lambda i: (i, 0, 0)),
                   pl.BlockSpec((1, 1, lout), lambda i: (i, 0, 0)),
                   pl.BlockSpec((1, 1, lout), lambda i: (i, 0, 0))),
        scratch_shapes=[pltpu.VMEM((hpad, kl), jnp.float32)],
        compiler_params=pltpu.CompilerParams(
            dimension_semantics=("parallel",), vmem_limit_bytes=VMEM_LIMIT),
    )(x_packed, wb)
    return y, ps, pq, h * m_tile


def bn_scale_bias(ps, pq, group_rows, cout, gamma, count):
    """Fold training-mode BatchNorm (weight=gamma, bias=0) into scale/bias from
    per-group partials via the parallel (Chan et al.) mean/variance combination."""
    s = ps.reshape(-1, cout)          # groups = (image block, x position)
    q = pq.reshape(-1, cout)
    assert s.shape[0] * group_rows == count
    mean = jnp.sum(s, axis=0) / count
    gmean = s / group_rows
    m2 = jnp.sum(q, axis=0) + group_rows * jnp.sum((gmean - mean) ** 2, axis=0)
    var = jnp.maximum(m2 / count, 0.0)
    scale = gamma * lax.rsqrt(var + BN_EPS)
    return scale, -mean * scale


def affine_add(r_mat, sc_mat, scale2, bias2, scale_sc, bias_sc, w):
    """out = r*scale2 + bias2 + sc*scale_sc + bias_sc on packed (rows, W*Cout)."""
    rows, l = r_mat.shape
    assert rows % 8 == 0
    tile_r = _pick_tile(rows, 8, bytes_per_unit=l * 12)
    vec = lambda v: jnp.tile(v.astype(jnp.float32), w).reshape(1, l)
    return pl.pallas_call(
        _affine_add_kernel,
        out_shape=jax.ShapeDtypeStruct((rows, l), jnp.float32),
        grid=(rows // tile_r,),
        in_specs=[pl.BlockSpec((tile_r, l), lambda i: (i, 0)),
                  pl.BlockSpec((tile_r, l), lambda i: (i, 0)),
                  pl.BlockSpec((1, l), lambda i: (0, 0)),
                  pl.BlockSpec((1, l), lambda i: (0, 0)),
                  pl.BlockSpec((1, l), lambda i: (0, 0)),
                  pl.BlockSpec((1, l), lambda i: (0, 0))],
        out_specs=pl.BlockSpec((tile_r, l), lambda i: (i, 0)),
        input_output_aliases={0: 0},     # write the result over the conv2 buffer
        compiler_params=pltpu.CompilerParams(
            dimension_semantics=("parallel",), vmem_limit_bytes=VMEM_LIMIT),
    )(r_mat, sc_mat, vec(scale2), vec(bias2), vec(scale_sc), vec(bias_sc))


# ---------------------------------------------------------------- block forward

def basic_block_ms(x, params, k_size=3, stride=1):
    """Spiking residual block forward. x: (T, B, Cin, H, W) f32 -> (T, B, Cout, H, W)."""
    if stride != 1:
        # TODO(synk): strided Snn_Conv2d + MaxPool3d shortcut not implemented in Pallas.
        raise NotImplementedError("stride != 1 not supported")
    t, b, cin, h, w = x.shape
    pad = 1 if k_size == 3 else 0
    w1, w2, w_sc = params["w1"], params["w2"], params["w_sc"]
    c_mid, cout = w1.shape[0], w2.shape[0]
    assert (b * h) % 8 == 0 and w % 8 == 0 and h % 8 == 0
    count = t * b * h * w

    # One-time conversion to packed channels-last (minor dim = W*C, lane-dense at
    # native channel count).  When blocks are stacked this layout should be kept
    # end-to-end; the final transpose below is the model-boundary conversion.
    xp = jnp.transpose(x, (0, 1, 3, 4, 2)).reshape(t, b * h, w * cin)
    xp_bf = xp.astype(jnp.bfloat16)          # conv operand cast once on the host

    # ---- residual branch
    s1 = mem_update_affine(xp, jnp.ones((cin,), jnp.float32),
                           jnp.zeros((cin,), jnp.float32), w)               # bf16 spikes
    r1, ps1, pq1, g1 = snn_conv2d_packed(s1.reshape(t * b, h, w * cin), w1, k_size, pad, h, w)
    scale1, bias1 = bn_scale_bias(ps1, pq1, g1, c_mid, THRESH, count)       # batch_norm_2d
    s2 = mem_update_affine(r1.reshape(t, b * h, w * c_mid), scale1, bias1, w)   # bn1 fused
    r2, ps2, pq2, g2 = snn_conv2d_packed(s2.reshape(t * b, h, w * c_mid), w2, k_size, pad, h, w)
    scale2, bias2 = bn_scale_bias(ps2, pq2, g2, cout, 0.2 * THRESH, count)  # batch_norm_2d1

    # ---- shortcut branch (stride == 1: MaxPool3d is identity)
    if cin != cout:
        sc, pss, pqs, gs = snn_conv2d_packed(xp_bf.reshape(t * b, h, w * cin), w_sc, 1, 0, h, w)
        scale_sc, bias_sc = bn_scale_bias(pss, pqs, gs, cout, THRESH, count)
        sc_mat = sc.reshape(t * b * h, w * cout)
    else:
        sc_mat = xp.reshape(t * b * h, w * cout)
        scale_sc = jnp.ones((cout,), jnp.float32)
        bias_sc = jnp.zeros((cout,), jnp.float32)

    # ---- bn2 + bn_sc + residual add (fused, lane-dense, output aliases r2)
    out_mat = affine_add(r2.reshape(t * b * h, w * cout), sc_mat,
                         scale2, bias2, scale_sc, bias_sc, w)
    out = out_mat.reshape(t, b, h, w, cout)
    return jnp.transpose(out, (0, 1, 4, 2, 3))


# ---------------------------------------------------------------- pure-JAX reference

def _ref_mem_update(x):
    mem = x[0]
    spike = (mem > THRESH).astype(jnp.float32)
    outs = [spike]
    for i in range(1, TIME_WINDOW):
        mem = mem * DECAY * (1.0 - spike) + x[i]
        spike = (mem > THRESH).astype(jnp.float32)
        outs.append(spike)
    return jnp.stack(outs)


def _ref_conv(x, w, stride, pad):
    t, b, c, h, wd = x.shape
    out = lax.conv_general_dilated(
        x.reshape(t * b, c, h, wd), w, (stride, stride),
        [(pad, pad), (pad, pad)],
        dimension_numbers=("NCHW", "OIHW", "NCHW"),
        precision=lax.Precision.HIGHEST)
    return out.reshape(t, b, w.shape[0], out.shape[2], out.shape[3])


def _ref_bn(x, gamma):
    mean = x.mean(axis=(0, 1, 3, 4), keepdims=True)
    var = jnp.square(x - mean).mean(axis=(0, 1, 3, 4), keepdims=True)
    return gamma * (x - mean) * lax.rsqrt(var + BN_EPS)


def ref_basic_block_ms(x, params, k_size=3, stride=1):
    assert stride == 1
    pad = 1 if k_size == 3 else 0
    w1, w2, w_sc = params["w1"], params["w2"], params["w_sc"]
    cin, cout = x.shape[2], w2.shape[0]
    r = _ref_mem_update(x)
    r = _ref_conv(r, w1, 1, pad)
    r = _ref_bn(r, THRESH)
    r = _ref_mem_update(r)
    r = _ref_conv(r, w2, 1, pad)
    r = _ref_bn(r, 0.2 * THRESH)
    if cin != cout:
        sc = _ref_conv(x, w_sc, 1, 0)
        sc = _ref_bn(sc, THRESH)
    else:
        sc = x
    return r + sc


# ---------------------------------------------------------------- main

if __name__ == "__main__":
    B, CIN, COUT, H, W = 2, 4, 8, 16, 16
    K_SIZE, STRIDE, E = 3, 1, 0.5
    C_MID = int(COUT * E)

    key = jax.random.PRNGKey(0)
    kx, k1, k2, k3 = jax.random.split(key, 4)
    # Inputs/weights are made bf16-exact so the bf16 MXU path matches the f32 reference.
    bf_exact = lambda a: a.astype(jnp.bfloat16).astype(jnp.float32)
    x = bf_exact(jax.random.normal(kx, (TIME_WINDOW, B, CIN, H, W), jnp.float32))
    params = {
        "w1": bf_exact(0.2 * jax.random.normal(k1, (C_MID, CIN, K_SIZE, K_SIZE), jnp.float32)),
        "w2": bf_exact(0.2 * jax.random.normal(k2, (COUT, C_MID, K_SIZE, K_SIZE), jnp.float32)),
        "w_sc": bf_exact(0.2 * jax.random.normal(k3, (COUT, CIN, 1, 1), jnp.float32)),
    }

    fwd = jax.jit(functools.partial(basic_block_ms, k_size=K_SIZE, stride=STRIDE))
    out = jax.block_until_ready(fwd(x, params))

    ref = jax.block_until_ready(
        jax.jit(functools.partial(ref_basic_block_ms, k_size=K_SIZE, stride=STRIDE))(x, params))

    assert out.shape == (TIME_WINDOW, B, COUT, H, W), out.shape
    err = float(jnp.max(jnp.abs(out - ref)))
    assert jnp.allclose(out, ref, atol=2e-3, rtol=2e-3), err
    print("KERNEL_OK")
</pallas_src>

<mosaic_0001>
module attributes {stable_mosaic.version = 11 : i64} {
  func.func @_mem_update_kernel(%arg0: i32, %arg1: memref<5x8x64xf32, #tpu.memory_space<vmem>>, %arg2: memref<1x64xf32, #tpu.memory_space<vmem>>, %arg3: memref<1x64xf32, #tpu.memory_space<vmem>>, %arg4: memref<5x8x64xbf16, #tpu.memory_space<vmem>>) attributes {dimension_semantics = [#tpu.dimension_semantics<parallel>], iteration_bounds = array<i64: 4>, scalar_prefetch = 0 : i64, scratch_operands = 0 : i64, tpu.core_type = #tpu.core_type<tc>, window_params = [{transform_indices = @transform_0, window_bounds = array<i64: 5, 8, 64>}, {pipeline_mode = #tpu.pipeline_mode<synchronous>, transform_indices = @transform_1, window_bounds = array<i64: 1, 64>}, {pipeline_mode = #tpu.pipeline_mode<synchronous>, transform_indices = @transform_2, window_bounds = array<i64: 1, 64>}, {transform_indices = @transform_3, window_bounds = array<i64: 5, 8, 64>}]} {
    %c0 = arith.constant 0 : index
    %c0_0 = arith.constant 0 : index
    %0 = vector.load %arg2[%c0, %c0_0] : memref<1x64xf32, #tpu.memory_space<vmem>>, vector<1x64xf32>
    %c0_1 = arith.constant 0 : index
    %c0_2 = arith.constant 0 : index
    %1 = vector.load %arg3[%c0_1, %c0_2] : memref<1x64xf32, #tpu.memory_space<vmem>>, vector<1x64xf32>
    %c0_3 = arith.constant 0 : index
    %c0_4 = arith.constant 0 : index
    %c0_5 = arith.constant 0 : index
    %2 = vector.load %arg1[%c0_3, %c0_4, %c0_5] : memref<5x8x64xf32, #tpu.memory_space<vmem>>, vector<1x8x64xf32>
    %3 = vector.shape_cast %2 : vector<1x8x64xf32> to vector<8x64xf32>
    %4 = vector.broadcast %0 : vector<1x64xf32> to vector<8x64xf32>
    %5 = arith.mulf %3, %4 : vector<8x64xf32>
    %6 = vector.broadcast %1 : vector<1x64xf32> to vector<8x64xf32>
    %7 = arith.addf %5, %6 : vector<8x64xf32>
    %cst = arith.constant 5.000000e-01 : f32
    %8 = vector.broadcast %cst : f32 to vector<8x64xf32>
    %9 = arith.cmpf ogt, %7, %8 : vector<8x64xf32>
    %10 = arith.extui %9 : vector<8x64xi1> to vector<8x64xi32>
    %11 = arith.sitofp %10 : vector<8x64xi32> to vector<8x64xf32>
    %12 = arith.truncf %11 : vector<8x64xf32> to vector<8x64xbf16>
    %c0_6 = arith.constant 0 : index
    %c0_7 = arith.constant 0 : index
    %c0_8 = arith.constant 0 : index
    %13 = vector.load %arg4[%c0_6, %c0_7, %c0_8] : memref<5x8x64xbf16, #tpu.memory_space<vmem>>, vector<1x8x64xbf16>
    %14 = vector.shape_cast %13 : vector<1x8x64xbf16> to vector<8x64xbf16>
    %15 = vector.shape_cast %12 : vector<8x64xbf16> to vector<1x8x64xbf16>
    tpu.vector_store %arg4[%c0_6, %c0_7, %c0_8], %15 {strides = array<i32>} : memref<5x8x64xbf16, #tpu.memory_space<vmem>>, vector<1x8x64xbf16>,
    %c1 = arith.constant 1 : index
    %c0_9 = arith.constant 0 : index
    %c0_10 = arith.constant 0 : index
    %16 = vector.load %arg1[%c1, %c0_9, %c0_10] : memref<5x8x64xf32, #tpu.memory_space<vmem>>, vector<1x8x64xf32>
    %17 = vector.shape_cast %16 : vector<1x8x64xf32> to vector<8x64xf32>
    %18 = vector.broadcast %0 : vector<1x64xf32> to vector<8x64xf32>
    %19 = arith.mulf %17, %18 : vector<8x64xf32>
    %20 = vector.broadcast %1 : vector<1x64xf32> to vector<8x64xf32>
    %21 = arith.addf %19, %20 : vector<8x64xf32>
    %cst_11 = arith.constant 2.500000e-01 : f32
    %22 = vector.broadcast %cst_11 : f32 to vector<8x64xf32>
    %23 = arith.mulf %7, %22 : vector<8x64xf32>
    %cst_12 = arith.constant 1.000000e+00 : f32
    %24 = vector.broadcast %cst_12 : f32 to vector<8x64xf32>
    %25 = arith.subf %24, %11 : vector<8x64xf32>
    %26 = arith.mulf %23, %25 : vector<8x64xf32>
    %27 = arith.addf %26, %21 : vector<8x64xf32>
    %cst_13 = arith.constant 5.000000e-01 : f32
    %28 = vector.broadcast %cst_13 : f32 to vector<8x64xf32>
    %29 = arith.cmpf ogt, %27, %28 : vector<8x64xf32>
    %30 = arith.extui %29 : vector<8x64xi1> to vector<8x64xi32>
    %31 = arith.sitofp %30 : vector<8x64xi32> to vector<8x64xf32>
    %32 = arith.truncf %31 : vector<8x64xf32> to vector<8x64xbf16>
    %c1_14 = arith.constant 1 : index
    %c0_15 = arith.constant 0 : index
    %c0_16 = arith.constant 0 : index
    %33 = vector.load %arg4[%c1_14, %c0_15, %c0_16] : memref<5x8x64xbf16, #tpu.memory_space<vmem>>, vector<1x8x64xbf16>
    %34 = vector.shape_cast %33 : vector<1x8x64xbf16> to vector<8x64xbf16>
    %35 = vector.shape_cast %32 : vector<8x64xbf16> to vector<1x8x64xbf16>
    tpu.vector_store %arg4[%c1_14, %c0_15, %c0_16], %35 {strides = array<i32>} : memref<5x8x64xbf16, #tpu.memory_space<vmem>>, vector<1x8x64xbf16>,
    %c2 = arith.constant 2 : index
    %c0_17 = arith.constant 0 : index
    %c0_18 = arith.constant 0 : index
    %36 = vector.load %arg1[%c2, %c0_17, %c0_18] : memref<5x8x64xf32, #tpu.memory_space<vmem>>, vector<1x8x64xf32>
    %37 = vector.shape_cast %36 : vector<1x8x64xf32> to vector<8x64xf32>
    %38 = vector.broadcast %0 : vector<1x64xf32> to vector<8x64xf32>
    %39 = arith.mulf %37, %38 : vector<8x64xf32>
    %40 = vector.broadcast %1 : vector<1x64xf32> to vector<8x64xf32>
    %41 = arith.addf %39, %40 : vector<8x64xf32>
    %cst_19 = arith.constant 2.500000e-01 : f32
    %42 = vector.broadcast %cst_19 : f32 to vector<8x64xf32>
    %43 = arith.mulf %27, %42 : vector<8x64xf32>
    %cst_20 = arith.constant 1.000000e+00 : f32
    %44 = vector.broadcast %cst_20 : f32 to vector<8x64xf32>
    %45 = arith.subf %44, %31 : vector<8x64xf32>
    %46 = arith.mulf %43, %45 : vector<8x64xf32>
    %47 = arith.addf %46, %41 : vector<8x64xf32>
    %cst_21 = arith.constant 5.000000e-01 : f32
    %48 = vector.broadcast %cst_21 : f32 to vector<8x64xf32>
    %49 = arith.cmpf ogt, %47, %48 : vector<8x64xf32>
    %50 = arith.extui %49 : vector<8x64xi1> to vector<8x64xi32>
    %51 = arith.sitofp %50 : vector<8x64xi32> to vector<8x64xf32>
    %52 = arith.truncf %51 : vector<8x64xf32> to vector<8x64xbf16>
    %c2_22 = arith.constant 2 : index
    %c0_23 = arith.constant 0 : index
    %c0_24 = arith.constant 0 : index
    %53 = vector.load %arg4[%c2_22, %c0_23, %c0_24] : memref<5x8x64xbf16, #tpu.memory_space<vmem>>, vector<1x8x64xbf16>
    %54 = vector.shape_cast %53 : vector<1x8x64xbf16> to vector<8x64xbf16>
    %55 = vector.shape_cast %52 : vector<8x64xbf16> to vector<1x8x64xbf16>
    tpu.vector_store %arg4[%c2_22, %c0_23, %c0_24], %55 {strides = array<i32>} : memref<5x8x64xbf16, #tpu.memory_space<vmem>>, vector<1x8x64xbf16>,
    %c3 = arith.constant 3 : index
    %c0_25 = arith.constant 0 : index
    %c0_26 = arith.constant 0 : index
    %56 = vector.load %arg1[%c3, %c0_25, %c0_26] : memref<5x8x64xf32, #tpu.memory_space<vmem>>, vector<1x8x64xf32>
    %57 = vector.shape_cast %56 : vector<1x8x64xf32> to vector<8x64xf32>
    %58 = vector.broadcast %0 : vector<1x64xf32> to vector<8x64xf32>
    %59 = arith.mulf %57, %58 : vector<8x64xf32>
    %60 = vector.broadcast %1 : vector<1x64xf32> to vector<8x64xf32>
    %61 = arith.addf %59, %60 : vector<8x64xf32>
    %cst_27 = arith.constant 2.500000e-01 : f32
    %62 = vector.broadcast %cst_27 : f32 to vector<8x64xf32>
    %63 = arith.mulf %47, %62 : vector<8x64xf32>
    %cst_28 = arith.constant 1.000000e+00 : f32
    %64 = vector.broadcast %cst_28 : f32 to vector<8x64xf32>
    %65 = arith.subf %64, %51 : vector<8x64xf32>
    %66 = arith.mulf %63, %65 : vector<8x64xf32>
    %67 = arith.addf %66, %61 : vector<8x64xf32>
    %cst_29 = arith.constant 5.000000e-01 : f32
    %68 = vector.broadcast %cst_29 : f32 to vector<8x64xf32>
    %69 = arith.cmpf ogt, %67, %68 : vector<8x64xf32>
    %70 = arith.extui %69 : vector<8x64xi1> to vector<8x64xi32>
    %71 = arith.sitofp %70 : vector<8x64xi32> to vector<8x64xf32>
    %72 = arith.truncf %71 : vector<8x64xf32> to vector<8x64xbf16>
    %c3_30 = arith.constant 3 : index
    %c0_31 = arith.constant 0 : index
    %c0_32 = arith.constant 0 : index
    %73 = vector.load %arg4[%c3_30, %c0_31, %c0_32] : memref<5x8x64xbf16, #tpu.memory_space<vmem>>, vector<1x8x64xbf16>
    %74 = vector.shape_cast %73 : vector<1x8x64xbf16> to vector<8x64xbf16>
    %75 = vector.shape_cast %72 : vector<8x64xbf16> to vector<1x8x64xbf16>
    tpu.vector_store %arg4[%c3_30, %c0_31, %c0_32], %75 {strides = array<i32>} : memref<5x8x64xbf16, #tpu.memory_space<vmem>>, vector<1x8x64xbf16>,
    %c4 = arith.constant 4 : index
    %c0_33 = arith.constant 0 : index
    %c0_34 = arith.constant 0 : index
    %76 = vector.load %arg1[%c4, %c0_33, %c0_34] : memref<5x8x64xf32, #tpu.memory_space<vmem>>, vector<1x8x64xf32>
    %77 = vector.shape_cast %76 : vector<1x8x64xf32> to vector<8x64xf32>
    %78 = vector.broadcast %0 : vector<1x64xf32> to vector<8x64xf32>
    %79 = arith.mulf %77, %78 : vector<8x64xf32>
    %80 = vector.broadcast %1 : vector<1x64xf32> to vector<8x64xf32>
    %81 = arith.addf %79, %80 : vector<8x64xf32>
    %cst_35 = arith.constant 2.500000e-01 : f32
    %82 = vector.broadcast %cst_35 : f32 to vector<8x64xf32>
    %83 = arith.mulf %67, %82 : vector<8x64xf32>
    %cst_36 = arith.constant 1.000000e+00 : f32
    %84 = vector.broadcast %cst_36 : f32 to vector<8x64xf32>
    %85 = arith.subf %84, %71 : vector<8x64xf32>
    %86 = arith.mulf %83, %85 : vector<8x64xf32>
    %87 = arith.addf %86, %81 : vector<8x64xf32>
    %cst_37 = arith.constant 5.000000e-01 : f32
    %88 = vector.broadcast %cst_37 : f32 to vector<8x64xf32>
    %89 = arith.cmpf ogt, %87, %88 : vector<8x64xf32>
    %90 = arith.extui %89 : vector<8x64xi1> to vector<8x64xi32>
    %91 = arith.sitofp %90 : vector<8x64xi32> to vector<8x64xf32>
    %92 = arith.truncf %91 : vector<8x64xf32> to vector<8x64xbf16>
    %c4_38 = arith.constant 4 : index
    %c0_39 = arith.constant 0 : index
    %c0_40 = arith.constant 0 : index
    %93 = vector.load %arg4[%c4_38, %c0_39, %c0_40] : memref<5x8x64xbf16, #tpu.memory_space<vmem>>, vector<1x8x64xbf16>
    %94 = vector.shape_cast %93 : vector<1x8x64xbf16> to vector<8x64xbf16>
    %95 = vector.shape_cast %92 : vector<8x64xbf16> to vector<1x8x64xbf16>
    tpu.vector_store %arg4[%c4_38, %c0_39, %c0_40], %95 {strides = array<i32>} : memref<5x8x64xbf16, #tpu.memory_space<vmem>>, vector<1x8x64xbf16>,
    return
  }
  func.func @transform_0(%arg0: i32) -> (i32, i32, i32) {
    %c0_i32 = arith.constant 0 : i32
    %c0_i32_0 = arith.constant 0 : i32
    %c0_i32_1 = arith.constant 0 : i32
    return %c0_i32, %arg0, %c0_i32_0 : i32, i32, i32
  }
  func.func @transform_1(%arg0: i32) -> (i32, i32) {
    %c0_i32 = arith.constant 0 : i32
    %c0_i32_0 = arith.constant 0 : i32
    %c0_i32_1 = arith.constant 0 : i32
    return %c0_i32, %c0_i32_0 : i32, i32
  }
  func.func @transform_2(%arg0: i32) -> (i32, i32) {
    %c0_i32 = arith.constant 0 : i32
    %c0_i32_0 = arith.constant 0 : i32
    %c0_i32_1 = arith.constant 0 : i32
    return %c0_i32, %c0_i32_0 : i32, i32
  }
  func.func @transform_3(%arg0: i32) -> (i32, i32, i32) {
    %c0_i32 = arith.constant 0 : i32
    %c0_i32_0 = arith.constant 0 : i32
    %c0_i32_1 = arith.constant 0 : i32
    return %c0_i32, %arg0, %c0_i32_0 : i32, i32, i32
  }
}

module attributes {stable_mosaic.version = 11 : i64} {
  func.func @_conv_kernel(%arg0: i32, %arg1: memref<1x16x64xbf16, #tpu.memory_space<vmem>>, %arg2: memref<3x128x64xbf16, #tpu.memory_space<vmem>>, %arg3: memref<1x16x64xf32, #tpu.memory_space<vmem>>, %arg4: memref<1x1x64xf32, #tpu.memory_space<vmem>>, %arg5: memref<1x1x64xf32, #tpu.memory_space<vmem>>, %arg6: memref<24x128xf32, #tpu.memory_space<vmem>>) attributes {dimension_semantics = [#tpu.dimension_semantics<parallel>], iteration_bounds = array<i64: 10>, scalar_prefetch = 0 : i64, scratch_operands = 1 : i64, tpu.core_type = #tpu.core_type<tc>, window_params = [{transform_indices = @transform_0, window_bounds = array<i64: 1, 16, 64>}, {pipeline_mode = #tpu.pipeline_mode<synchronous>, transform_indices = @transform_1, window_bounds = array<i64: 3, 128, 64>}, {transform_indices = @transform_2, window_bounds = array<i64: 1, 16, 64>}, {transform_indices = @transform_3, window_bounds = array<i64: 1, 1, 64>}, {transform_indices = @transform_4, window_bounds = array<i64: 1, 1, 64>}]} {
    %cst = arith.constant 0.000000e+00 : f32
    %0 = vector.broadcast %cst : f32 to vector<24x128xf32>
    %c0 = arith.constant 0 : index
    %c0_0 = arith.constant 0 : index
    %1 = vector.load %arg6[%c0, %c0_0] : memref<24x128xf32, #tpu.memory_space<vmem>>, vector<24x128xf32>
    tpu.vector_store %arg6[%c0, %c0_0], %0 {strides = array<i32>} : memref<24x128xf32, #tpu.memory_space<vmem>>, vector<24x128xf32>,
    %c0_1 = arith.constant 0 : index
    %c0_2 = arith.constant 0 : index
    %c0_3 = arith.constant 0 : index
    %2 = vector.load %arg1[%c0_1, %c0_2, %c0_3] : memref<1x16x64xbf16, #tpu.memory_space<vmem>>, vector<1x16x64xbf16>
    %3 = vector.shape_cast %2 : vector<1x16x64xbf16> to vector<16x64xbf16>
    %4 = arith.extf %3 : vector<16x64xbf16> to vector<16x64xf32>
    %c0_4 = arith.constant 0 : index
    %c0_5 = arith.constant 0 : index
    %5 = vector.load %arg6[%c0_4, %c0_5] : memref<24x128xf32, #tpu.memory_space<vmem>>, vector<16x64xf32>
    tpu.vector_store %arg6[%c0_4, %c0_5], %4 {strides = array<i32>} : memref<24x128xf32, #tpu.memory_space<vmem>>, vector<16x64xf32>,
    %c0_6 = arith.constant 0 : index
    %c0_7 = arith.constant 0 : index
    %6 = vector.load %arg6[%c0_6, %c0_7] : memref<24x128xf32, #tpu.memory_space<vmem>>, vector<24x128xf32>
    %c1_i32 = arith.constant 1 : i32
    %7 = tpu.dynamic_rotate %6 by %c1_i32 dim 0 : vector<24x128xf32>, i32 -> vector<24x128xf32>
    %8 = vector.extract_strided_slice %7 {offsets = [0, 0], sizes = [16, 128], strides = [1, 1]} : vector<24x128xf32> to vector<16x128xf32>
    %9 = arith.truncf %8 : vector<16x128xf32> to vector<16x128xbf16>
    %c0_8 = arith.constant 0 : index
    %c0_9 = arith.constant 0 : index
    %c0_10 = arith.constant 0 : index
    %10 = vector.load %arg2[%c0_8, %c0_9, %c0_10] : memref<3x128x64xbf16, #tpu.memory_space<vmem>>, vector<1x128x64xbf16>
    %11 = vector.shape_cast %10 : vector<1x128x64xbf16> to vector<128x64xbf16>
    %cst_11 = arith.constant dense<0.000000e+00> : vector<16x64xf32>
    %12 = tpu.matmul %9, %11, %cst_11 {dimension_numbers = #tpu.dot_dimension_numbers<[1], [0], [0], [1], [0, 0, 1, 1], [], []>} : vector<16x128xbf16>, vector<128x64xbf16>, vector<16x64xf32> -> vector<16x64xf32>
    %13 = vector.extract_strided_slice %6 {offsets = [0, 0], sizes = [16, 128], strides = [1, 1]} : vector<24x128xf32> to vector<16x128xf32>
    %14 = arith.truncf %13 : vector<16x128xf32> to vector<16x128xbf16>
    %c1 = arith.constant 1 : index
    %c0_12 = arith.constant 0 : index
    %c0_13 = arith.constant 0 : index
    %15 = vector.load %arg2[%c1, %c0_12, %c0_13] : memref<3x128x64xbf16, #tpu.memory_space<vmem>>, vector<1x128x64xbf16>
    %16 = vector.shape_cast %15 : vector<1x128x64xbf16> to vector<128x64xbf16>
    %cst_14 = arith.constant dense<0.000000e+00> : vector<16x64xf32>
    %17 = tpu.matmul %14, %16, %cst_14 {dimension_numbers = #tpu.dot_dimension_numbers<[1], [0], [0], [1], [0, 0, 1, 1], [], []>} : vector<16x128xbf16>, vector<128x64xbf16>, vector<16x64xf32> -> vector<16x64xf32>
    %18 = arith.addf %12, %17 : vector<16x64xf32>
    %c23_i32 = arith.constant 23 : i32
    %19 = tpu.dynamic_rotate %6 by %c23_i32 dim 0 : vector<24x128xf32>, i32 -> vector<24x128xf32>
    %20 = vector.extract_strided_slice %19 {offsets = [0, 0], sizes = [16, 128], strides = [1, 1]} : vector<24x128xf32> to vector<16x128xf32>
    %21 = arith.truncf %20 : vector<16x128xf32> to vector<16x128xbf16>
    %c2 = arith.constant 2 : index
    %c0_15 = arith.constant 0 : index
    %c0_16 = arith.constant 0 : index
    %22 = vector.load %arg2[%c2, %c0_15, %c0_16] : memref<3x128x64xbf16, #tpu.memory_space<vmem>>, vector<1x128x64xbf16>
    %23 = vector.shape_cast %22 : vector<1x128x64xbf16> to vector<128x64xbf16>
    %cst_17 = arith.constant dense<0.000000e+00> : vector<16x64xf32>
    %24 = tpu.matmul %21, %23, %cst_17 {dimension_numbers = #tpu.dot_dimension_numbers<[1], [0], [0], [1], [0, 0, 1, 1], [], []>} : vector<16x128xbf16>, vector<128x64xbf16>, vector<16x64xf32> -> vector<16x64xf32>
    %25 = arith.addf %18, %24 : vector<16x64xf32>
    %c0_18 = arith.constant 0 : index
    %c0_19 = arith.constant 0 : index
    %c0_20 = arith.constant 0 : index
    %26 = vector.load %arg3[%c0_18, %c0_19, %c0_20] : memref<1x16x64xf32, #tpu.memory_space<vmem>>, vector<1x16x64xf32>
    %27 = vector.shape_cast %26 : vector<1x16x64xf32> to vector<16x64xf32>
    %28 = vector.shape_cast %25 : vector<16x64xf32> to vector<1x16x64xf32>
    tpu.vector_store %arg3[%c0_18, %c0_19, %c0_20], %28 {strides = array<i32>} : memref<1x16x64xf32, #tpu.memory_space<vmem>>, vector<1x16x64xf32>,
    %cst_21 = arith.constant dense<0.000000e+00> : vector<64xf32>
    %29 = vector.multi_reduction <add>, %25, %cst_21 [0] : vector<16x64xf32> to vector<64xf32>
    %30 = vector.shape_cast %29 : vector<64xf32> to vector<1x64xf32>
    %cst_22 = arith.constant 6.250000e-02 : f32
    %31 = vector.broadcast %cst_22 : f32 to vector<1x64xf32>
    %32 = arith.mulf %30, %31 : vector<1x64xf32>
    %33 = vector.broadcast %32 : vector<1x64xf32> to vector<16x64xf32>
    %34 = arith.subf %25, %33 : vector<16x64xf32>
    %c0_23 = arith.constant 0 : index
    %c0_24 = arith.constant 0 : index
    %c0_25 = arith.constant 0 : index
    %35 = vector.load %arg4[%c0_23, %c0_24, %c0_25] : memref<1x1x64xf32, #tpu.memory_space<vmem>>, vector<1x1x64xf32>
    %36 = vector.shape_cast %35 : vector<1x1x64xf32> to vector<1x64xf32>
    %37 = vector.shape_cast %30 : vector<1x64xf32> to vector<1x1x64xf32>
    tpu.vector_store %arg4[%c0_23, %c0_24, %c0_25], %37 {strides = array<i32>} : memref<1x1x64xf32, #tpu.memory_space<vmem>>, vector<1x1x64xf32>,
    %38 = arith.mulf %34, %34 : vector<16x64xf32>
    %cst_26 = arith.constant dense<0.000000e+00> : vector<64xf32>
    %39 = vector.multi_reduction <add>, %38, %cst_26 [0] : vector<16x64xf32> to vector<64xf32>
    %40 = vector.shape_cast %39 : vector<64xf32> to vector<1x64xf32>
    %c0_27 = arith.constant 0 : index
    %c0_28 = arith.constant 0 : index
    %c0_29 = arith.constant 0 : index
    %41 = vector.load %arg5[%c0_27, %c0_28, %c0_29] : memref<1x1x64xf32, #tpu.memory_space<vmem>>, vector<1x1x64xf32>
    %42 = vector.shape_cast %41 : vector<1x1x64xf32> to vector<1x64xf32>
    %43 = vector.shape_cast %40 : vector<1x64xf32> to vector<1x1x64xf32>
    tpu.vector_store %arg5[%c0_27, %c0_28, %c0_29], %43 {strides = array<i32>} : memref<1x1x64xf32, #tpu.memory_space<vmem>>, vector<1x1x64xf32>,
    return
  }
  func.func @transform_0(%arg0: i32) -> (i32, i32, i32) {
    %c0_i32 = arith.constant 0 : i32
    %c0_i32_0 = arith.constant 0 : i32
    %c0_i32_1 = arith.constant 0 : i32
    return %arg0, %c0_i32, %c0_i32_0 : i32, i32, i32
  }
  func.func @transform_1(%arg0: i32) -> (i32, i32, i32) {
    %c0_i32 = arith.constant 0 : i32
    %c0_i32_0 = arith.constant 0 : i32
    %c0_i32_1 = arith.constant 0 : i32
    %c0_i32_2 = arith.constant 0 : i32
    return %c0_i32, %c0_i32_0, %c0_i32_1 : i32, i32, i32
  }
  func.func @transform_2(%arg0: i32) -> (i32, i32, i32) {
    %c0_i32 = arith.constant 0 : i32
    %c0_i32_0 = arith.constant 0 : i32
    %c0_i32_1 = arith.constant 0 : i32
    return %arg0, %c0_i32, %c0_i32_0 : i32, i32, i32
  }
  func.func @transform_3(%arg0: i32) -> (i32, i32, i32) {
    %c0_i32 = arith.constant 0 : i32
    %c0_i32_0 = arith.constant 0 : i32
    %c0_i32_1 = arith.constant 0 : i32
    return %arg0, %c0_i32, %c0_i32_0 : i32, i32, i32
  }
  func.func @transform_4(%arg0: i32) -> (i32, i32, i32) {
    %c0_i32 = arith.constant 0 : i32
    %c0_i32_0 = arith.constant 0 : i32
    %c0_i32_1 = arith.constant 0 : i32
    return %arg0, %c0_i32, %c0_i32_0 : i32, i32, i32
  }
}

module attributes {stable_mosaic.version = 11 : i64} {
  func.func @_conv_kernel(%arg0: i32, %arg1: memref<1x16x64xbf16, #tpu.memory_space<vmem>>, %arg2: memref<3x128x128xbf16, #tpu.memory_space<vmem>>, %arg3: memref<1x16x128xf32, #tpu.memory_space<vmem>>, %arg4: memref<1x1x128xf32, #tpu.memory_space<vmem>>, %arg5: memref<1x1x128xf32, #tpu.memory_space<vmem>>, %arg6: memref<24x128xf32, #tpu.memory_space<vmem>>) attributes {dimension_semantics = [#tpu.dimension_semantics<parallel>], iteration_bounds = array<i64: 10>, scalar_prefetch = 0 : i64, scratch_operands = 1 : i64, tpu.core_type = #tpu.core_type<tc>, window_params = [{transform_indices = @transform_0, window_bounds = array<i64: 1, 16, 64>}, {pipeline_mode = #tpu.pipeline_mode<synchronous>, transform_indices = @transform_1, window_bounds = array<i64: 3, 128, 128>}, {transform_indices = @transform_2, window_bounds = array<i64: 1, 16, 128>}, {transform_indices = @transform_3, window_bounds = array<i64: 1, 1, 128>}, {transform_indices = @transform_4, window_bounds = array<i64: 1, 1, 128>}]} {
    %cst = arith.constant 0.000000e+00 : f32
    %0 = vector.broadcast %cst : f32 to vector<24x128xf32>
    %c0 = arith.constant 0 : index
    %c0_0 = arith.constant 0 : index
    %1 = vector.load %arg6[%c0, %c0_0] : memref<24x128xf32, #tpu.memory_space<vmem>>, vector<24x128xf32>
    tpu.vector_store %arg6[%c0, %c0_0], %0 {strides = array<i32>} : memref<24x128xf32, #tpu.memory_space<vmem>>, vector<24x128xf32>,
    %c0_1 = arith.constant 0 : index
    %c0_2 = arith.constant 0 : index
    %c0_3 = arith.constant 0 : index
    %2 = vector.load %arg1[%c0_1, %c0_2, %c0_3] : memref<1x16x64xbf16, #tpu.memory_space<vmem>>, vector<1x16x64xbf16>
    %3 = vector.shape_cast %2 : vector<1x16x64xbf16> to vector<16x64xbf16>
    %4 = arith.extf %3 : vector<16x64xbf16> to vector<16x64xf32>
    %c0_4 = arith.constant 0 : index
    %c0_5 = arith.constant 0 : index
    %5 = vector.load %arg6[%c0_4, %c0_5] : memref<24x128xf32, #tpu.memory_space<vmem>>, vector<16x64xf32>
    tpu.vector_store %arg6[%c0_4, %c0_5], %4 {strides = array<i32>} : memref<24x128xf32, #tpu.memory_space<vmem>>, vector<16x64xf32>,
    %c0_6 = arith.constant 0 : index
    %c0_7 = arith.constant 0 : index
    %6 = vector.load %arg6[%c0_6, %c0_7] : memref<24x128xf32, #tpu.memory_space<vmem>>, vector<24x128xf32>
    %c1_i32 = arith.constant 1 : i32
    %7 = tpu.dynamic_rotate %6 by %c1_i32 dim 0 : vector<24x128xf32>, i32 -> vector<24x128xf32>
    %8 = vector.extract_strided_slice %7 {offsets = [0, 0], sizes = [16, 128], strides = [1, 1]} : vector<24x128xf32> to vector<16x128xf32>
    %9 = arith.truncf %8 : vector<16x128xf32> to vector<16x128xbf16>
    %c0_8 = arith.constant 0 : index
    %c0_9 = arith.constant 0 : index
    %c0_10 = arith.constant 0 : index
    %10 = vector.load %arg2[%c0_8, %c0_9, %c0_10] : memref<3x128x128xbf16, #tpu.memory_space<vmem>>, vector<1x128x128xbf16>
    %11 = vector.shape_cast %10 : vector<1x128x128xbf16> to vector<128x128xbf16>
    %cst_11 = arith.constant dense<0.000000e+00> : vector<16x128xf32>
    %12 = tpu.matmul %9, %11, %cst_11 {dimension_numbers = #tpu.dot_dimension_numbers<[1], [0], [0], [1], [0, 0, 1, 1], [], []>} : vector<16x128xbf16>, vector<128x128xbf16>, vector<16x128xf32> -> vector<16x128xf32>
    %13 = vector.extract_strided_slice %6 {offsets = [0, 0], sizes = [16, 128], strides = [1, 1]} : vector<24x128xf32> to vector<16x128xf32>
    %14 = arith.truncf %13 : vector<16x128xf32> to vector<16x128xbf16>
    %c1 = arith.constant 1 : index
    %c0_12 = arith.constant 0 : index
    %c0_13 = arith.constant 0 : index
    %15 = vector.load %arg2[%c1, %c0_12, %c0_13] : memref<3x128x128xbf16, #tpu.memory_space<vmem>>, vector<1x128x128xbf16>
    %16 = vector.shape_cast %15 : vector<1x128x128xbf16> to vector<128x128xbf16>
    %cst_14 = arith.constant dense<0.000000e+00> : vector<16x128xf32>
    %17 = tpu.matmul %14, %16, %cst_14 {dimension_numbers = #tpu.dot_dimension_numbers<[1], [0], [0], [1], [0, 0, 1, 1], [], []>} : vector<16x128xbf16>, vector<128x128xbf16>, vector<16x128xf32> -> vector<16x128xf32>
    %18 = arith.addf %12, %17 : vector<16x128xf32>
    %c23_i32 = arith.constant 23 : i32
    %19 = tpu.dynamic_rotate %6 by %c23_i32 dim 0 : vector<24x128xf32>, i32 -> vector<24x128xf32>
    %20 = vector.extract_strided_slice %19 {offsets = [0, 0], sizes = [16, 128], strides = [1, 1]} : vector<24x128xf32> to vector<16x128xf32>
    %21 = arith.truncf %20 : vector<16x128xf32> to vector<16x128xbf16>
    %c2 = arith.constant 2 : index
    %c0_15 = arith.constant 0 : index
    %c0_16 = arith.constant 0 : index
    %22 = vector.load %arg2[%c2, %c0_15, %c0_16] : memref<3x128x128xbf16, #tpu.memory_space<vmem>>, vector<1x128x128xbf16>
    %23 = vector.shape_cast %22 : vector<1x128x128xbf16> to vector<128x128xbf16>
    %cst_17 = arith.constant dense<0.000000e+00> : vector<16x128xf32>
    %24 = tpu.matmul %21, %23, %cst_17 {dimension_numbers = #tpu.dot_dimension_numbers<[1], [0], [0], [1], [0, 0, 1, 1], [], []>} : vector<16x128xbf16>, vector<128x128xbf16>, vector<16x128xf32> -> vector<16x128xf32>
    %25 = arith.addf %18, %24 : vector<16x128xf32>
    %c0_18 = arith.constant 0 : index
    %c0_19 = arith.constant 0 : index
    %c0_20 = arith.constant 0 : index
    %26 = vector.load %arg3[%c0_18, %c0_19, %c0_20] : memref<1x16x128xf32, #tpu.memory_space<vmem>>, vector<1x16x128xf32>
    %27 = vector.shape_cast %26 : vector<1x16x128xf32> to vector<16x128xf32>
    %28 = vector.shape_cast %25 : vector<16x128xf32> to vector<1x16x128xf32>
    tpu.vector_store %arg3[%c0_18, %c0_19, %c0_20], %28 {strides = array<i32>} : memref<1x16x128xf32, #tpu.memory_space<vmem>>, vector<1x16x128xf32>,
    %cst_21 = arith.constant dense<0.000000e+00> : vector<128xf32>
    %29 = vector.multi_reduction <add>, %25, %cst_21 [0] : vector<16x128xf32> to vector<128xf32>
    %30 = vector.shape_cast %29 : vector<128xf32> to vector<1x128xf32>
    %cst_22 = arith.constant 6.250000e-02 : f32
    %31 = vector.broadcast %cst_22 : f32 to vector<1x128xf32>
    %32 = arith.mulf %30, %31 : vector<1x128xf32>
    %33 = vector.broadcast %32 : vector<1x128xf32> to vector<16x128xf32>
    %34 = arith.subf %25, %33 : vector<16x128xf32>
    %c0_23 = arith.constant 0 : index
    %c0_24 = arith.constant 0 : index
    %c0_25 = arith.constant 0 : index
    %35 = vector.load %arg4[%c0_23, %c0_24, %c0_25] : memref<1x1x128xf32, #tpu.memory_space<vmem>>, vector<1x1x128xf32>
    %36 = vector.shape_cast %35 : vector<1x1x128xf32> to vector<1x128xf32>
    %37 = vector.shape_cast %30 : vector<1x128xf32> to vector<1x1x128xf32>
    tpu.vector_store %arg4[%c0_23, %c0_24, %c0_25], %37 {strides = array<i32>} : memref<1x1x128xf32, #tpu.memory_space<vmem>>, vector<1x1x128xf32>,
    %38 = arith.mulf %34, %34 : vector<16x128xf32>
    %cst_26 = arith.constant dense<0.000000e+00> : vector<128xf32>
    %39 = vector.multi_reduction <add>, %38, %cst_26 [0] : vector<16x128xf32> to vector<128xf32>
    %40 = vector.shape_cast %39 : vector<128xf32> to vector<1x128xf32>
    %c0_27 = arith.constant 0 : index
    %c0_28 = arith.constant 0 : index
    %c0_29 = arith.constant 0 : index
    %41 = vector.load %arg5[%c0_27, %c0_28, %c0_29] : memref<1x1x128xf32, #tpu.memory_space<vmem>>, vector<1x1x128xf32>
    %42 = vector.shape_cast %41 : vector<1x1x128xf32> to vector<1x128xf32>
    %43 = vector.shape_cast %40 : vector<1x128xf32> to vector<1x1x128xf32>
    tpu.vector_store %arg5[%c0_27, %c0_28, %c0_29], %43 {strides = array<i32>} : memref<1x1x128xf32, #tpu.memory_space<vmem>>, vector<1x1x128xf32>,
    return
  }
  func.func @transform_0(%arg0: i32) -> (i32, i32, i32) {
    %c0_i32 = arith.constant 0 : i32
    %c0_i32_0 = arith.constant 0 : i32
    %c0_i32_1 = arith.constant 0 : i32
    return %arg0, %c0_i32, %c0_i32_0 : i32, i32, i32
  }
  func.func @transform_1(%arg0: i32) -> (i32, i32, i32) {
    %c0_i32 = arith.constant 0 : i32
    %c0_i32_0 = arith.constant 0 : i32
    %c0_i32_1 = arith.constant 0 : i32
    %c0_i32_2 = arith.constant 0 : i32
    return %c0_i32, %c0_i32_0, %c0_i32_1 : i32, i32, i32
  }
  func.func @transform_2(%arg0: i32) -> (i32, i32, i32) {
    %c0_i32 = arith.constant 0 : i32
    %c0_i32_0 = arith.constant 0 : i32
    %c0_i32_1 = arith.constant 0 : i32
    return %arg0, %c0_i32, %c0_i32_0 : i32, i32, i32
  }
  func.func @transform_3(%arg0: i32) -> (i32, i32, i32) {
    %c0_i32 = arith.constant 0 : i32
    %c0_i32_0 = arith.constant 0 : i32
    %c0_i32_1 = arith.constant 0 : i32
    return %arg0, %c0_i32, %c0_i32_0 : i32, i32, i32
  }
  func.func @transform_4(%arg0: i32) -> (i32, i32, i32) {
    %c0_i32 = arith.constant 0 : i32
    %c0_i32_0 = arith.constant 0 : i32
    %c0_i32_1 = arith.constant 0 : i32
    return %arg0, %c0_i32, %c0_i32_0 : i32, i32, i32
  }
}

module attributes {stable_mosaic.version = 11 : i64} {
  func.func @_conv_kernel(%arg0: i32, %arg1: memref<1x16x64xbf16, #tpu.memory_space<vmem>>, %arg2: memref<1x128x128xbf16, #tpu.memory_space<vmem>>, %arg3: memref<1x16x128xf32, #tpu.memory_space<vmem>>, %arg4: memref<1x1x128xf32, #tpu.memory_space<vmem>>, %arg5: memref<1x1x128xf32, #tpu.memory_space<vmem>>, %arg6: memref<16x128xf32, #tpu.memory_space<vmem>>) attributes {dimension_semantics = [#tpu.dimension_semantics<parallel>], iteration_bounds = array<i64: 10>, scalar_prefetch = 0 : i64, scratch_operands = 1 : i64, tpu.core_type = #tpu.core_type<tc>, window_params = [{transform_indices = @transform_0, window_bounds = array<i64: 1, 16, 64>}, {pipeline_mode = #tpu.pipeline_mode<synchronous>, transform_indices = @transform_1, window_bounds = array<i64: 1, 128, 128>}, {transform_indices = @transform_2, window_bounds = array<i64: 1, 16, 128>}, {transform_indices = @transform_3, window_bounds = array<i64: 1, 1, 128>}, {transform_indices = @transform_4, window_bounds = array<i64: 1, 1, 128>}]} {
    %cst = arith.constant 0.000000e+00 : f32
    %0 = vector.broadcast %cst : f32 to vector<16x128xf32>
    %c0 = arith.constant 0 : index
    %c0_0 = arith.constant 0 : index
    %1 = vector.load %arg6[%c0, %c0_0] : memref<16x128xf32, #tpu.memory_space<vmem>>, vector<16x128xf32>
    tpu.vector_store %arg6[%c0, %c0_0], %0 {strides = array<i32>} : memref<16x128xf32, #tpu.memory_space<vmem>>, vector<16x128xf32>,
    %c0_1 = arith.constant 0 : index
    %c0_2 = arith.constant 0 : index
    %c0_3 = arith.constant 0 : index
    %2 = vector.load %arg1[%c0_1, %c0_2, %c0_3] : memref<1x16x64xbf16, #tpu.memory_space<vmem>>, vector<1x16x64xbf16>
    %3 = vector.shape_cast %2 : vector<1x16x64xbf16> to vector<16x64xbf16>
    %4 = arith.extf %3 : vector<16x64xbf16> to vector<16x64xf32>
    %c0_4 = arith.constant 0 : index
    %c0_5 = arith.constant 0 : index
    %5 = vector.load %arg6[%c0_4, %c0_5] : memref<16x128xf32, #tpu.memory_space<vmem>>, vector<16x64xf32>
    tpu.vector_store %arg6[%c0_4, %c0_5], %4 {strides = array<i32>} : memref<16x128xf32, #tpu.memory_space<vmem>>, vector<16x64xf32>,
    %c0_6 = arith.constant 0 : index
    %c0_7 = arith.constant 0 : index
    %6 = vector.load %arg6[%c0_6, %c0_7] : memref<16x128xf32, #tpu.memory_space<vmem>>, vector<16x128xf32>
    %7 = arith.truncf %6 : vector<16x128xf32> to vector<16x128xbf16>
    %c0_8 = arith.constant 0 : index
    %c0_9 = arith.constant 0 : index
    %c0_10 = arith.constant 0 : index
    %8 = vector.load %arg2[%c0_8, %c0_9, %c0_10] : memref<1x128x128xbf16, #tpu.memory_space<vmem>>, vector<1x128x128xbf16>
    %9 = vector.shape_cast %8 : vector<1x128x128xbf16> to vector<128x128xbf16>
    %cst_11 = arith.constant dense<0.000000e+00> : vector<16x128xf32>
    %10 = tpu.matmul %7, %9, %cst_11 {dimension_numbers = #tpu.dot_dimension_numbers<[1], [0], [0], [1], [0, 0, 1, 1], [], []>} : vector<16x128xbf16>, vector<128x128xbf16>, vector<16x128xf32> -> vector<16x128xf32>
    %c0_12 = arith.constant 0 : index
    %c0_13 = arith.constant 0 : index
    %c0_14 = arith.constant 0 : index
    %11 = vector.load %arg3[%c0_12, %c0_13, %c0_14] : memref<1x16x128xf32, #tpu.memory_space<vmem>>, vector<1x16x128xf32>
    %12 = vector.shape_cast %11 : vector<1x16x128xf32> to vector<16x128xf32>
    %13 = vector.shape_cast %10 : vector<16x128xf32> to vector<1x16x128xf32>
    tpu.vector_store %arg3[%c0_12, %c0_13, %c0_14], %13 {strides = array<i32>} : memref<1x16x128xf32, #tpu.memory_space<vmem>>, vector<1x16x128xf32>,
    %cst_15 = arith.constant dense<0.000000e+00> : vector<128xf32>
    %14 = vector.multi_reduction <add>, %10, %cst_15 [0] : vector<16x128xf32> to vector<128xf32>
    %15 = vector.shape_cast %14 : vector<128xf32> to vector<1x128xf32>
    %cst_16 = arith.constant 6.250000e-02 : f32
    %16 = vector.broadcast %cst_16 : f32 to vector<1x128xf32>
    %17 = arith.mulf %15, %16 : vector<1x128xf32>
    %18 = vector.broadcast %17 : vector<1x128xf32> to vector<16x128xf32>
    %19 = arith.subf %10, %18 : vector<16x128xf32>
    %c0_17 = arith.constant 0 : index
    %c0_18 = arith.constant 0 : index
    %c0_19 = arith.constant 0 : index
    %20 = vector.load %arg4[%c0_17, %c0_18, %c0_19] : memref<1x1x128xf32, #tpu.memory_space<vmem>>, vector<1x1x128xf32>
    %21 = vector.shape_cast %20 : vector<1x1x128xf32> to vector<1x128xf32>
    %22 = vector.shape_cast %15 : vector<1x128xf32> to vector<1x1x128xf32>
    tpu.vector_store %arg4[%c0_17, %c0_18, %c0_19], %22 {strides = array<i32>} : memref<1x1x128xf32, #tpu.memory_space<vmem>>, vector<1x1x128xf32>,
    %23 = arith.mulf %19, %19 : vector<16x128xf32>
    %cst_20 = arith.constant dense<0.000000e+00> : vector<128xf32>
    %24 = vector.multi_reduction <add>, %23, %cst_20 [0] : vector<16x128xf32> to vector<128xf32>
    %25 = vector.shape_cast %24 : vector<128xf32> to vector<1x128xf32>
    %c0_21 = arith.constant 0 : index
    %c0_22 = arith.constant 0 : index
    %c0_23 = arith.constant 0 : index
    %26 = vector.load %arg5[%c0_21, %c0_22, %c0_23] : memref<1x1x128xf32, #tpu.memory_space<vmem>>, vector<1x1x128xf32>
    %27 = vector.shape_cast %26 : vector<1x1x128xf32> to vector<1x128xf32>
    %28 = vector.shape_cast %25 : vector<1x128xf32> to vector<1x1x128xf32>
    tpu.vector_store %arg5[%c0_21, %c0_22, %c0_23], %28 {strides = array<i32>} : memref<1x1x128xf32, #tpu.memory_space<vmem>>, vector<1x1x128xf32>,
    return
  }
  func.func @transform_0(%arg0: i32) -> (i32, i32, i32) {
    %c0_i32 = arith.constant 0 : i32
    %c0_i32_0 = arith.constant 0 : i32
    %c0_i32_1 = arith.constant 0 : i32
    return %arg0, %c0_i32, %c0_i32_0 : i32, i32, i32
  }
  func.func @transform_1(%arg0: i32) -> (i32, i32, i32) {
    %c0_i32 = arith.constant 0 : i32
    %c0_i32_0 = arith.constant 0 : i32
    %c0_i32_1 = arith.constant 0 : i32
    %c0_i32_2 = arith.constant 0 : i32
    return %c0_i32, %c0_i32_0, %c0_i32_1 : i32, i32, i32
  }
  func.func @transform_2(%arg0: i32) -> (i32, i32, i32) {
    %c0_i32 = arith.constant 0 : i32
    %c0_i32_0 = arith.constant 0 : i32
    %c0_i32_1 = arith.constant 0 : i32
    return %arg0, %c0_i32, %c0_i32_0 : i32, i32, i32
  }
  func.func @transform_3(%arg0: i32) -> (i32, i32, i32) {
    %c0_i32 = arith.constant 0 : i32
    %c0_i32_0 = arith.constant 0 : i32
    %c0_i32_1 = arith.constant 0 : i32
    return %arg0, %c0_i32, %c0_i32_0 : i32, i32, i32
  }
  func.func @transform_4(%arg0: i32) -> (i32, i32, i32) {
    %c0_i32 = arith.constant 0 : i32
    %c0_i32_0 = arith.constant 0 : i32
    %c0_i32_1 = arith.constant 0 : i32
    return %arg0, %c0_i32, %c0_i32_0 : i32, i32, i32
  }
}

module attributes {stable_mosaic.version = 11 : i64} {
  func.func @_affine_add_kernel(%arg0: i32, %arg1: memref<40x128xf32, #tpu.memory_space<vmem>>, %arg2: memref<40x128xf32, #tpu.memory_space<vmem>>, %arg3: memref<1x128xf32, #tpu.memory_space<vmem>>, %arg4: memref<1x128xf32, #tpu.memory_space<vmem>>, %arg5: memref<1x128xf32, #tpu.memory_space<vmem>>, %arg6: memref<1x128xf32, #tpu.memory_space<vmem>>, %arg7: memref<40x128xf32, #tpu.memory_space<vmem>>) attributes {dimension_semantics = [#tpu.dimension_semantics<parallel>], iteration_bounds = array<i64: 4>, scalar_prefetch = 0 : i64, scratch_operands = 0 : i64, tpu.core_type = #tpu.core_type<tc>, window_params = [{transform_indices = @transform_0, window_bounds = array<i64: 40, 128>}, {transform_indices = @transform_1, window_bounds = array<i64: 40, 128>}, {pipeline_mode = #tpu.pipeline_mode<synchronous>, transform_indices = @transform_2, window_bounds = array<i64: 1, 128>}, {pipeline_mode = #tpu.pipeline_mode<synchronous>, transform_indices = @transform_3, window_bounds = array<i64: 1, 128>}, {pipeline_mode = #tpu.pipeline_mode<synchronous>, transform_indices = @transform_4, window_bounds = array<i64: 1, 128>}, {pipeline_mode = #tpu.pipeline_mode<synchronous>, transform_indices = @transform_5, window_bounds = array<i64: 1, 128>}, {transform_indices = @transform_6, window_bounds = array<i64: 40, 128>}]} {
    %c0 = arith.constant 0 : index
    %c0_0 = arith.constant 0 : index
    %0 = vector.load %arg1[%c0, %c0_0] : memref<40x128xf32, #tpu.memory_space<vmem>>, vector<40x128xf32>
    %c0_1 = arith.constant 0 : index
    %c0_2 = arith.constant 0 : index
    %1 = vector.load %arg3[%c0_1, %c0_2] : memref<1x128xf32, #tpu.memory_space<vmem>>, vector<1x128xf32>
    %2 = vector.broadcast %1 : vector<1x128xf32> to vector<40x128xf32>
    %3 = arith.mulf %0, %2 : vector<40x128xf32>
    %c0_3 = arith.constant 0 : index
    %c0_4 = arith.constant 0 : index
    %4 = vector.load %arg4[%c0_3, %c0_4] : memref<1x128xf32, #tpu.memory_space<vmem>>, vector<1x128xf32>
    %5 = vector.broadcast %4 : vector<1x128xf32> to vector<40x128xf32>
    %6 = arith.addf %3, %5 : vector<40x128xf32>
    %c0_5 = arith.constant 0 : index
    %c0_6 = arith.constant 0 : index
    %7 = vector.load %arg2[%c0_5, %c0_6] : memref<40x128xf32, #tpu.memory_space<vmem>>, vector<40x128xf32>
    %c0_7 = arith.constant 0 : index
    %c0_8 = arith.constant 0 : index
    %8 = vector.load %arg5[%c0_7, %c0_8] : memref<1x128xf32, #tpu.memory_space<vmem>>, vector<1x128xf32>
    %9 = vector.broadcast %8 : vector<1x128xf32> to vector<40x128xf32>
    %10 = arith.mulf %7, %9 : vector<40x128xf32>
    %11 = arith.addf %6, %10 : vector<40x128xf32>
    %c0_9 = arith.constant 0 : index
    %c0_10 = arith.constant 0 : index
    %12 = vector.load %arg6[%c0_9, %c0_10] : memref<1x128xf32, #tpu.memory_space<vmem>>, vector<1x128xf32>
    %13 = vector.broadcast %12 : vector<1x128xf32> to vector<40x128xf32>
    %14 = arith.addf %11, %13 : vector<40x128xf32>
    %c0_11 = arith.constant 0 : index
    %c0_12 = arith.constant 0 : index
    %15 = vector.load %arg7[%c0_11, %c0_12] : memref<40x128xf32, #tpu.memory_space<vmem>>, vector<40x128xf32>
    tpu.vector_store %arg7[%c0_11, %c0_12], %14 {strides = array<i32>} : memref<40x128xf32, #tpu.memory_space<vmem>>, vector<40x128xf32>,
    return
  }
  func.func @transform_0(%arg0: i32) -> (i32, i32) {
    %c0_i32 = arith.constant 0 : i32
    %c0_i32_0 = arith.constant 0 : i32
    return %arg0, %c0_i32 : i32, i32
  }
  func.func @transform_1(%arg0: i32) -> (i32, i32) {
    %c0_i32 = arith.constant 0 : i32
    %c0_i32_0 = arith.constant 0 : i32
    return %arg0, %c0_i32 : i32, i32
  }
  func.func @transform_2(%arg0: i32) -> (i32, i32) {
    %c0_i32 = arith.constant 0 : i32
    %c0_i32_0 = arith.constant 0 : i32
    %c0_i32_1 = arith.constant 0 : i32
    return %c0_i32, %c0_i32_0 : i32, i32
  }
  func.func @transform_3(%arg0: i32) -> (i32, i32) {
    %c0_i32 = arith.constant 0 : i32
    %c0_i32_0 = arith.constant 0 : i32
    %c0_i32_1 = arith.constant 0 : i32
    return %c0_i32, %c0_i32_0 : i32, i32
  }
  func.func @transform_4(%arg0: i32) -> (i32, i32) {
    %c0_i32 = arith.constant 0 : i32
    %c0_i32_0 = arith.constant 0 : i32
    %c0_i32_1 = arith.constant 0 : i32
    return %c0_i32, %c0_i32_0 : i32, i32
  }
  func.func @transform_5(%arg0: i32) -> (i32, i32) {
    %c0_i32 = arith.constant 0 : i32
    %c0_i32_0 = arith.constant 0 : i32
    %c0_i32_1 = arith.constant 0 : i32
    return %c0_i32, %c0_i32_0 : i32, i32
  }
  func.func @transform_6(%arg0: i32) -> (i32, i32) {
    %c0_i32 = arith.constant 0 : i32
    %c0_i32_0 = arith.constant 0 : i32
    return %arg0, %c0_i32 : i32, i32
  }
}

</mosaic_0001>

<bundles_post_ra>
// kernel: tile.32
= control target key start
LH: loop header
LB: loop body
LE: loop exit
PB: predicated region body
PF: predicated region fallthrough
CT: control target
= control target key end

     0   :  { %s20_s0 = inlined_call_operand.<no memory space> [shape: f32[], index: 0, kind: input, shape index: {}]   ;;  %s21_s1 = inlined_call_operand.vmem [shape: f32[1,64], index: 1, kind: output, shape index: {}]  }
   0x1   :  { %v2_v0 = vstv %s20_s0 }
   0x2   :  { %3 = vst [vmem:[%s21_s1] sm:$0x1] %v2_v0 }

// kernel: basic_block_ms.6
= control target key start
LH: loop header
LB: loop body
LE: loop exit
PB: predicated region body
PF: predicated region fallthrough
CT: control target
= control target key end

     0   :  { %s514_s12 = smov 0   ;;  %s516_s13 = smov 0   ;;  %s604_s0 = inlined_call_operand.vmem [shape: f32[5,32,64], index: 0, kind: input, shape index: {}]   ;;  %s605_s1 = inlined_call_operand.vmem [shape: f32[1,64], index: 1, kind: input, shape index: {}]   ;;  %s606_s2 = inlined_call_operand.vmem [shape: f32[1,64], index: 2, kind: input, shape index: {}]   ;;  %s607_s3 = inlined_call_operand.vmem [shape: bf16[5,32,64], index: 3, kind: output, shape index: {}]  }
   0x1   :  { %s518_s14 = smov 0  }
   0x2 LB: > { %s417_s15 = sadd.s32 4294967295, %s491_s14   ;;  %s531_s16 = sadd.s32 1, %s491_s14   ;;  %s491_s14 = sphi %s518_s14, %s611_s14   ;;  %s487_s13 = sphi %s516_s13, %s610_s13   ;;  %s483_s12 = sphi %s514_s12, %s609_s12  }
   0x3   : > { %s17_s17 = ssub.s32 %s491_s14, %s531_s16  ;;  %s20_s18 = sadd.s32 1, %s487_s13 }
   0x4   : > { %p18_p0 = scmp.eq.s32.totalorder %s17_s17, 0  ;;  %p27_p1 = scmp.ne.s32.totalorder %s487_s13, %s483_s12 }
   0x5   : > { %p28_p2 = scmp.eq.s32.totalorder %s491_s14, 0  ;;  %p99_p3 = scmp.eq.s32.totalorder %s417_s15, 3 }
   0x6   : > { %s542_s19 = scalar_select %p18_p0, %s487_s13, %s20_s18  }
   0x7   : > { %p29_p4 = por %p28_p2, %p27_p1  ;;  %p544_p5 = por %p99_p3, %p27_p1 }
   0x8   : > { %p420_p6 = scmp.ge.s32.totalorder %s491_s14, 4 }
   0xa   : > { %127 = sbr.rel (%p420_p6) target bundleno = 24 (0x18), region = 24 }
   0xf   : > { %130 = sbr.rel (!%p29_p4) target bundleno = 24 (0x18), region = 28  ;;  %s132_s21 = sand.u32 (%p29_p4), 1, %s487_s13  }
  0x10   : > { %s421_s22 = sshll.u32 (%p29_p4), %s491_s14, 3  ;;  %s441_s23 = smul.u32 (%p29_p4), 40, %s132_s21 }
  0x11   : > { %s136_s26 = scalar_lea.vmem (%p29_p4), %s604_s0, %s421_s22 }
  0x12   : > { %v173_v0 = vld [vmem:[%s136_s26] sm:$0xff] (%p29_p4)  ;;  %s134_s27 = scalar_lea.vmem (%p29_p4), [#allocation2], %s441_s23 }
  0x13   : > { %v175_v1 = vld [vmem:[%s136_s26 + $0x20] sm:$0xff] (%p29_p4)  ;;  %174 = vst [vmem:[%s134_s27] sm:$0xff] (%p29_p4), %v173_v0 }
  0x14   : > { %v177_v2 = vld [vmem:[%s136_s26 + $0x40] sm:$0xff]  ;;  %176 = vst [vmem:[%s134_s27 + $0x8] sm:$0xff] %v175_v1 }
  0x15   : > { %v179_v3 = vld [vmem:[%s136_s26 + $0x60] sm:$0xff]  ;;  %178 = vst [vmem:[%s134_s27 + $0x10] sm:$0xff] %v177_v2 }
  0x16   : > { %v181_v4 = vld [vmem:[%s136_s26 + $0x80] sm:$0xff]  ;;  %180 = vst [vmem:[%s134_s27 + $0x18] sm:$0xff] %v179_v3 }
  0x17   : > { %182 = vst [vmem:[%s134_s27 + $0x20] sm:$0xff] %v181_v4 }
  0x18 PF: > { %p422_p7 = scmp.ge.s32.totalorder %s491_s14, 1  ;;  %p187_p8 = scmp.lt.s32.totalorder %s491_s14, 5 }
  0x1a   : > { %p188_p9 = pnand %p422_p7, %p187_p8 }
  0x1b   : > { %s194_s28 = sand.u32 (!%p188_p9), 1, %s483_s12  }
  0x1c   : > { %191 = sbr.rel (%p188_p9) target bundleno = 85 (0x55), region = 66 }
  0x1d   : > { %s442_s29 = smul.u32 (!%p188_p9), 40, %s194_s28 }
  0x1e   : > { %s443_s8 = smul.u32 (!%p188_p9), 20, %s194_s28 }
  0x1f   : > { %s563_s7 = scalar_lea.vmem (!%p188_p9), [#allocation2], %s442_s29 }
  0x20   : > { %s568_s9 = scalar_lea.vmem (!%p188_p9), [#allocation3], %s443_s8 }
  0x21   : > { %v423_v5 = vld [vmem:[%s605_s1] ss:$0 sm:$0xff]  ;;  %v426_v8 = vld [vmem:[%s563_s7 + $0x8] sm:$0xff]  ;;  %v493_v13 = vmov 0.0   ;;  %vm237_vm1 = vcmask 519168   ;;  %v429_v18 = vld [vmem:[%s563_s7 + $0x10] sm:$0xff] }
  0x22   : > { %v424_v6 = vld [vmem:[%s606_s2] ss:$0 sm:$0xff]  ;;  %v241_v11 = vmul.f32 %v426_v8, %v423_v5  ;;  %v255_v21 = vmul.f32 %v429_v18, %v423_v5  ;;  %s438_s10 = sshll.u32 (%p544_p5), %s417_s15, 2 }
  0x23   : > { %v218_v7 = vld [vmem:[%s563_s7] sm:$0xff]  ;;  %v432_v27 = vld [vmem:[%s563_s7 + $0x18] sm:$0xff]  ;;  %s303_s17 = scalar_lea.vmem (%p544_p5), %s607_s3, %s438_s10 }
  0x24   : > { %v225_v9 = vmul.f32 %v423_v5, %v218_v7  ;;  %v242_v17 = vadd.f32 %v424_v6, %v241_v11  ;;  %v256_v26 = vadd.f32 %v424_v6, %v255_v21  ;;  %v269_v30 = vmul.f32 %v432_v27, %v423_v5  ;;  %v435_v36 = vld [vmem:[%s563_s7 + $0x20] sm:$0xff] }
  0x25   : > { %v283_v39 = vmul.f32 %v435_v36, %v423_v5 }
  0x26   : > { %v232_v10 = vadd.f32 %v424_v6, %v225_v9  ;;  %v270_v35 = vadd.f32 %v424_v6, %v269_v30 }
  0x27   : > { %v284_v44 = vadd.f32 %v424_v6, %v283_v39 }
  0x28   : > { %vm233_vm0 = vcmp.gt.f32.partialorder %v232_v10, 0.5  ;;  %v243_v12 = vmul.f32 0.25, %v232_v10 }
  0x29   : > { %v425_v14 = vsel %vm233_vm0, 1.0, %v493_v13 }
  0x2a   : > { %v236_v15 = vpack.c.bf16 %v425_v14, %v425_v14  ;;  %v244_v16 = vsub.f32 1.0, %v425_v14 }
  0x2c   : > { %238 = vst.msk [vmem:[%s568_s9] sm:$0xf] %vm237_vm1, %v236_v15  ;;  %v245_v19 = vmul.f32 %v244_v16, %v243_v12 }
  0x2e   : > { %v246_v20 = vadd.f32 %v245_v19, %v242_v17 }
  0x30   : > { %vm247_vm2 = vcmp.gt.f32.partialorder %v246_v20, 0.5  ;;  %v257_v22 = vmul.f32 0.25, %v246_v20 }
  0x31   : > { %v427_v23 = vsel %vm247_vm2, 1.0, %v493_v13 }
  0x32   : > { %v250_v24 = vpack.c.bf16 %v427_v23, %v427_v23  ;;  %v258_v25 = vsub.f32 1.0, %v427_v23 }
  0x33   : > { %v320_v49 = vld [vmem:[%s568_s9] sm:$0xf] (%p544_p5) }
  0x34   : > { %428 = vst.msk [vmem:[%s568_s9 + $0x4] sm:$0xf] %vm237_vm1, %v250_v24  ;;  %v259_v28 = vmul.f32 %v258_v25, %v257_v22  ;;  %321 = vst [vmem:[%s303_s17] sm:$0xf] (%p544_p5), %v320_v49 }
  0x36   : > { %v260_v29 = vadd.f32 %v259_v28, %v256_v26 }
  0x38   : > { %vm261_vm3 = vcmp.gt.f32.partialorder %v260_v29, 0.5  ;;  %v271_v31 = vmul.f32 0.25, %v260_v29 }
  0x39   : > { %v430_v32 = vsel %vm261_vm3, 1.0, %v493_v13 }
  0x3a   : > { %v264_v33 = vpack.c.bf16 %v430_v32, %v430_v32  ;;  %v272_v34 = vsub.f32 1.0, %v430_v32 }
  0x3b   : > { %v322_v50 = vld [vmem:[%s568_s9 + $0x4] sm:$0xf] (%p544_p5) }
  0x3c   : > { %431 = vst.msk [vmem:[%s568_s9 + $0x8] sm:$0xf] %vm237_vm1, %v264_v33  ;;  %v273_v37 = vmul.f32 %v272_v34, %v271_v31  ;;  %323 = vst [vmem:[%s303_s17 + $0x10] sm:$0xf] (%p544_p5), %v322_v50 }
  0x3e   : > { %v274_v38 = vadd.f32 %v273_v37, %v270_v35 }
  0x40   : > { %vm275_vm4 = vcmp.gt.f32.partialorder %v274_v38, 0.5  ;;  %v285_v40 = vmul.f32 0.25, %v274_v38 }
  0x41   : > { %v433_v41 = vsel %vm275_vm4, 1.0, %v493_v13 }
  0x42   : > { %v278_v42 = vpack.c.bf16 %v433_v41, %v433_v41  ;;  %v286_v43 = vsub.f32 1.0, %v433_v41 }
  0x43   : > { %v324_v51 = vld [vmem:[%s568_s9 + $0x8] sm:$0xf] (%p544_p5) }
  0x44   : > { %434 = vst.msk [vmem:[%s568_s9 + $0xc] sm:$0xf] %vm237_vm1, %v278_v42  ;;  %v287_v45 = vmul.f32 %v286_v43, %v285_v40  ;;  %325 = vst [vmem:[%s303_s17 + $0x20] sm:$0xf] (%p544_p5), %v324_v51 }
  0x46   : > { %v288_v46 = vadd.f32 %v287_v45, %v284_v44 }
  0x48   : > { %vm289_vm5 = vcmp.gt.f32.partialorder %v288_v46, 0.5  ;;  %301 = sbr.rel (!%p544_p5) target bundleno = 85 (0x55), region = 74 }
  0x49   : > { %v436_v47 = vsel %vm289_vm5, 1.0, %v493_v13 }
  0x4a   : > { %v292_v48 = vpack.c.bf16 %v436_v47, %v436_v47 }
  0x4b   : > { %v326_v52 = vld [vmem:[%s568_s9 + $0xc] sm:$0xf] (%p544_p5) }
  0x4c   : > { %437 = vst.msk [vmem:[%s568_s9 + $0x10] sm:$0xf] %vm237_vm1, %v292_v48  ;;  %327 = vst [vmem:[%s303_s17 + $0x30] sm:$0xf] (%p544_p5), %v326_v52 }
  0x53   : > { %v328_v53 = vld [vmem:[%s568_s9 + $0x10] sm:$0xf] }
  0x54   : > { %329 = vst [vmem:[%s303_s17 + $0x40] sm:$0xf] %v328_v53 }
  0x55 PF: > { %p10_p10 = scmp.ge.s32.totalorder %s531_s16, 6   ;;  %s609_s12 = smov %s487_s13 }
  0x56   : > { %s610_s13 = smov %s542_s19  ;;  %s611_s14 = smov %s531_s16 }
  0x57   :  { %12 = sbr.rel (!%p10_p10) target bundleno = 2 (0x2), region = 154 }

// kernel: basic_block_ms.7
= control target key start
LH: loop header
LB: loop body
LE: loop exit
PB: predicated region body
PF: predicated region fallthrough
CT: control target
= control target key end

     0   :  { %s927_s15 = smov 0   ;;  %s1072_s0 = inlined_call_operand.vmem [shape: bf16[10,16,64], index: 0, kind: input, shape index: {}]   ;;  %s1073_s1 = inlined_call_operand.vmem [shape: bf16[3,128,64], index: 1, kind: input, shape index: {}]   ;;  %s1074_s2 = inlined_call_operand.vmem [shape: f32[10,16,64], index: 2, kind: output, shape index: {0}]   ;;  %s1075_s3 = inlined_call_operand.vmem [shape: f32[10,1,64], index: 3, kind: output, shape index: {1}]   ;;  %s1076_s4 = inlined_call_operand.vmem [shape: f32[10,1,64], index: 4, kind: output, shape index: {2}]  }
   0x1 LB: > { %s698_s16 = sadd.s32 4294967295, %s898_s15   ;;  %p702_p0 = scmp.ge.s32.totalorder %s898_s15, 1  ;;  %s898_s15 = sphi %s927_s15, %s15_s15  }
   0x2   : > { %p167_p1 = scmp.lt.s32.totalorder %s898_s15, 11 }
   0x4   : > { %p168_p2 = pnand %p702_p0, %p167_p1 }
   0x5   : > { %p199_p3 = scmp.lt.s32.totalorder (!%p168_p2), %s698_s16, 9 }
   0x6   : > { %171 = sbr.rel (%p168_p2) target bundleno = 312 (0x138), region = 28 }
   0xb   : > { %v868_v0 = vld [vmem:[%s1073_s1 + $0x78] sm:$0xff]   ;;  %v900_v1 = vmov 0.0   ;;  %v870_v3 = vld [vmem:[%s1073_s1 + $0x70] sm:$0xff]   ;;  %vm901_vm0 = vmmov 0   ;;  %v872_v5 = vld [vmem:[%s1073_s1 + $0x68] sm:$0xff]   ;;  %s1078_s16 = smov (!%p199_p3, %s698_s16), 9  ;;  %v232_v15 = vlaneseq }
   0xc   : > { %798 = vmatprep.subr.bf16.mxu0 %v900_v1  ;;  %216 = vst [vmem:[#allocation2] sm:$0xff] %v900_v1  ;;  %217 = vst [vmem:[#allocation2 + $0x8] sm:$0xff] %v900_v1  ;;  %818 = vmatprep.subr.bf16.mxu1 %v900_v1  ;;  %v869_v2 = vld [vmem:[%s1073_s1 + $0x38] sm:$0xff]   ;;  %v871_v4 = vld [vmem:[%s1073_s1 + $0x30] sm:$0xff]   ;;  %s765_s5 = sshll.u32 %s1078_s16, 3  ;;  %vm223_vm1 = vcmask 523264   ;;  %s211_s27 = scalar_lea.vmem %s1075_s3, %s1078_s16 }
   0xd   : > { %799 = vmatpush3.bf16.msra.mxu0 %v868_v0  ;;  %814 = vmatprep.mubr.msk.bf16.mxu0 %vm901_vm0, %v900_v1  ;;  %v873_v6 = vld [vmem:[%s1073_s1 + $0x28] sm:$0xff]   ;;  %v874_v7 = vld [vmem:[%s1073_s1 + $0x60] sm:$0xff]   ;;  %s203_s10 = scalar_lea.vmem %s1072_s0, %s765_s5  ;;  %v876_v9 = vld [vmem:[%s1073_s1 + $0x58] sm:$0xff]   ;;  %v233_v18 = vshrl.u32 %v232_v15, 7  ;;  %v231_v20 = vrot.slane %v900_v1, 7  ;;  %v452_v39 = vrot.slane %v900_v1, 1  ;;  %s214_s30 = scalar_lea.vmem %s1076_s4, %s1078_s16 }
   0xe   : > { %819 = vmatpush3.bf16.msra.mxu1 %v869_v2  ;;  %800 = vmatprep.subr.bf16.mxu0 %v900_v1  ;;  %v875_v8 = vld [vmem:[%s1073_s1 + $0x20] sm:$0xff]   ;;  %v877_v10 = vld [vmem:[%s1073_s1 + $0x18] sm:$0xff]   ;;  %v878_v14 = vld [vmem:[%s1073_s1 + $0x50] sm:$0xff]   ;;  %s766_s21 = sshll.u32 %s1078_s16, 4  ;;  %vm579_vm4 = vcmask 516096  }
   0xf   : > { %820 = vmatprep.subr.bf16.mxu1 %v900_v1  ;;  %834 = vmatprep.mubr.msk.bf16.mxu1 %vm901_vm0, %v900_v1  ;;  %v768_v11 = vld [vmem:[%s203_s10] sm:$0xff]   ;;  %v879_v16 = vld [vmem:[%s1073_s1 + $0x10] sm:$0xff]   ;;  %v880_v17 = vld [vmem:[%s1073_s1 + $0x48] sm:$0xff]   ;;  %vm234_vm2 = vcmp.lt.s32.totalorder %v233_v18, 1  ;;  %vm453_vm3 = vcmp.lt.s32.totalorder %v233_v18, 7  ;;  %s208_s24 = scalar_lea.vmem %s1074_s2, %s766_s21 }
  0x10   : > { %v769_v12 = vunpack.c.l.bf16 %v768_v11  ;;  %v770_v13 = vunpack.c.h.bf16 %v768_v11  ;;  %v881_v19 = vld [vmem:[%s1073_s1 + $0x8] sm:$0xff]   ;;  %v882_v21 = vld [vmem:[%s1073_s1 + $0x40] sm:$0xff]   ;;  %v884_v31 = vld [vmem:[%s1073_s1 + $0xb8] sm:$0xff]  }
  0x11   : > { %801 = vmatpush3.bf16.msra.mxu0 %v870_v3  ;;  %v883_v24 = vld [vmem:[%s1073_s1] sm:$0xff]   ;;  %v885_v32 = vld [vmem:[%s1073_s1 + $0xb0] sm:$0xff]   ;;  %v886_v33 = vld [vmem:[%s1073_s1 + $0xa8] sm:$0xff]  }
  0x12   : > { %821 = vmatpush3.bf16.msra.mxu1 %v871_v4  ;;  %802 = vmatprep.subr.bf16.mxu0 %v900_v1  ;;  %224 = vst.msk [vmem:[#allocation2] sm:$0xff] %vm223_vm1, %v769_v12  ;;  %225 = vst.msk [vmem:[#allocation2 + $0x8] sm:$0xff] %vm223_vm1, %v770_v13  ;;  %v887_v34 = vld [vmem:[%s1073_s1 + $0xa0] sm:$0xff]   ;;  %v888_v35 = vld [vmem:[%s1073_s1 + $0x98] sm:$0xff]  }
  0x13   : > { %822 = vmatprep.subr.bf16.mxu1 %v900_v1  ;;  %v889_v36 = vld [vmem:[%s1073_s1 + $0x90] sm:$0xff]   ;;  %v890_v40 = vld [vmem:[%s1073_s1 + $0x88] sm:$0xff]   ;;  %v891_v41 = vld [vmem:[%s1073_s1 + $0x80] sm:$0xff]  }
  0x15   : > { %803 = vmatpush3.bf16.msra.mxu0 %v872_v5 }
  0x16   : > { %823 = vmatpush3.bf16.msra.mxu1 %v873_v6  ;;  %804 = vmatprep.subr.bf16.mxu0 %v900_v1 }
  0x17   : > { %824 = vmatprep.subr.bf16.mxu1 %v900_v1 }
  0x19   : > { %805 = vmatpush3.bf16.msra.mxu0 %v874_v7  ;;  %v226_v22 = vld [vmem:[#allocation2] sm:$0xff]  ;;  %v227_v23 = vld [vmem:[#allocation2 + $0x8] sm:$0xff] }
  0x1a   : > { %825 = vmatpush3.bf16.msra.mxu1 %v875_v8  ;;  %806 = vmatprep.subr.bf16.mxu0 %v900_v1  ;;  %v229_v25 = vrot.slane %v226_v22, 7  ;;  %v230_v26 = vrot.slane %v227_v23, 7  ;;  %v254_v27 = vpack.c.bf16 %v227_v23, %v226_v22  ;;  %v450_v37 = vrot.slane %v226_v22, 1 }
  0x1b   : > { %826 = vmatprep.subr.bf16.mxu1 %v900_v1  ;;  %v451_v38 = vrot.slane %v227_v23, 1 }
  0x1c   : > { %v235_v28 = vsel %vm234_vm2, %v229_v25, %v230_v26  ;;  %v236_v29 = vsel %vm234_vm2, %v231_v20, %v229_v25 }
  0x1d   : > { %807 = vmatpush3.bf16.msra.mxu0 %v876_v9  ;;  %v237_v30 = vpack.c.bf16 %v235_v28, %v236_v29  ;;  %v454_v42 = vsel %vm453_vm3, %v451_v38, %v452_v39  ;;  %v455_v43 = vsel %vm453_vm3, %v450_v37, %v451_v38 }
  0x1e   : > { %827 = vmatpush3.bf16.msra.mxu1 %v877_v10  ;;  %808 = vmatprep.subr.bf16.mxu0 %v900_v1  ;;  %v456_v44 = vpack.c.bf16 %v454_v42, %v455_v43 }
  0x1f   : > { %828 = vmatprep.subr.bf16.mxu1 %v900_v1 }
  0x21   : > { %809 = vmatpush3.bf16.msra.mxu0 %v878_v14 }
  0x22   : > { %829 = vmatpush3.bf16.msra.mxu1 %v879_v16  ;;  %810 = vmatprep.subr.bf16.mxu0 %v900_v1 }
  0x23   : > { %830 = vmatprep.subr.bf16.mxu1 %v900_v1 }
  0x25   : > { %811 = vmatpush3.bf16.msra.mxu0 %v880_v17 }
  0x26   : > { %831 = vmatpush3.bf16.msra.mxu1 %v881_v19  ;;  %812 = vmatprep.subr.bf16.mxu0 %v900_v1 }
  0x27   : > { %832 = vmatprep.subr.bf16.mxu1 %v900_v1 }
  0x29   : > { %813 = vmatpush3.bf16.msra.mxu0 %v882_v21 }
  0x2a   : > { %833 = vmatpush3.bf16.msra.mxu1 %v883_v24  ;;  %838 = vmatprep.subr.bf16.mxu0 %v900_v1 }
  0x2c   : > { %815 = vmatmul.mubr.bf16.vlgmr.msra.gmra.mxu0 %v254_v27 }
  0x2d   : > { %835 = vmatmul.mubr.bf16.vlgmr.msra.gmra.mxu1 %v237_v30  ;;  %839 = vmatpush3.bf16.msra.mxu0 %v884_v31 }
  0x2e   : > { %840 = vmatprep.subr.bf16.mxu0 %v900_v1  ;;  %854 = vmatprep.mubr.msk.bf16.mxu0 %vm901_vm0, %v900_v1 }
  0x31   : > { %841 = vmatpush3.bf16.msra.mxu0 %v885_v32 }
  0x32   : > { %842 = vmatprep.subr.bf16.mxu0 %v900_v1 }
  0x35   : > { %843 = vmatpush3.bf16.msra.mxu0 %v886_v33 }
  0x36   : > { %844 = vmatprep.subr.bf16.mxu0 %v900_v1 }
  0x39   : > { %845 = vmatpush3.bf16.msra.mxu0 %v887_v34 }
  0x3a   : > { %846 = vmatprep.subr.bf16.mxu0 %v900_v1 }
  0x3d   : > { %847 = vmatpush3.bf16.msra.mxu0 %v888_v35 }
  0x3e   : > { %848 = vmatprep.subr.bf16.mxu0 %v900_v1 }
  0x41   : > { %849 = vmatpush3.bf16.msra.mxu0 %v889_v36 }
  0x42   : > { %850 = vmatprep.subr.bf16.mxu0 %v900_v1 }
  0x45   : > { %851 = vmatpush3.bf16.msra.mxu0 %v890_v40 }
  0x46   : > { %852 = vmatprep.subr.bf16.mxu0 %v900_v1 }
  0x49   : > { %853 = vmatpush3.bf16.msra.mxu0 %v891_v41 }
  0x4c   : > { %855 = vmatmul.mubr.bf16.vlgmr.msra.gmra.mxu0 %v456_v44 }
  0xec   : > { %v354_v45 = vpop.f32.mrf.mxu0 }
  0xed   : > { %v443_v46 = vpop.f32.mrf.mxu1 }
  0xee   : > { %v816_v47 = vpop.f32.mrf.mxu0  ;;  %v444_v53 = vadd.f32 %v443_v46, %v354_v45 }
  0xef   : > { %v836_v48 = vpop.f32.mrf.mxu1 }
  0xf0   : > { %v357_v49 = vpop.f32.mrf.mxu0 }
  0xf1   : > { %v446_v50 = vpop.f32.mrf.mxu1 }
  0xf2   : > { %v817_v51 = vpop.f32.mrf.mxu0  ;;  %v447_v57 = vadd.f32 %v446_v50, %v357_v49 }
  0xf3   : > { %v837_v52 = vpop.f32.mrf.mxu1 }
 0x10c   : > { %v556_v54 = vpop.f32.mrf.mxu0 }
 0x10d   : > { %v563_v55 = vadd.f32 %v556_v54, %v444_v53 }
 0x10e   : > { %v856_v56 = vpop.f32.mrf.mxu0 }
 0x10f   : > { %565 = vst.msk [vmem:[%s208_s24] sm:$0xff] %vm223_vm1, %v563_v55  ;;  %v567_v61 = vsel %vm223_vm1, %v563_v55, 0.0 }
 0x110   : > { %v559_v58 = vpop.f32.mrf.mxu0 }
 0x111   : > { %v564_v59 = vadd.f32 %v559_v58, %v447_v57 }
 0x112   : > { %v857_v60 = vpop.f32.mrf.mxu0 }
 0x113   : > { %566 = vst.msk [vmem:[%s208_s24 + $0x8] sm:$0xff] %vm223_vm1, %v564_v59  ;;  %v568_v62 = vsel %vm223_vm1, %v564_v59, 0.0 }
 0x114   : > { %v569_v63 = vadd.f32 %v568_v62, %v567_v61 }
 0x116   : > { %v570_v0 = vrot.slane %v569_v63, 4 }
 0x118   : > { %v571_v1 = vadd.f32 %v570_v0, %v569_v63 }
 0x11a   : > { %v572_v2 = vrot.slane %v571_v1, 2 }
 0x11c   : > { %v573_v3 = vadd.f32 %v572_v2, %v571_v1 }
 0x11e   : > { %v574_v4 = vrot.slane %v573_v3, 1 }
 0x120   : > { %v575_v5 = vadd.f32 %v574_v4, %v573_v3 }
 0x122   : > { %v576_v6 = vmul.f32 0.0625, %v575_v5  ;;  %580 = vst.msk [vmem:[%s211_s27] sm:$0x1] %vm579_vm4, %v575_v5 }
 0x124   : > { %v577_v7 = vsub.f32 %v563_v55, %v576_v6  ;;  %v578_v8 = vsub.f32 %v564_v59, %v576_v6 }
 0x126   : > { %v581_v9 = vmul.f32 %v577_v7, %v577_v7  ;;  %v582_v10 = vmul.f32 %v578_v8, %v578_v8 }
 0x128   : > { %v583_v11 = vsel %vm223_vm1, %v581_v9, 0.0  ;;  %v584_v12 = vsel %vm223_vm1, %v582_v10, 0.0 }
 0x129   : > { %v585_v13 = vadd.f32 %v584_v12, %v583_v11 }
 0x12b   : > { %v586_v14 = vrot.slane %v585_v13, 4 }
 0x12d   : > { %v587_v15 = vadd.f32 %v586_v14, %v585_v13 }
 0x12f   : > { %v588_v16 = vrot.slane %v587_v15, 2 }
 0x131   : > { %v589_v17 = vadd.f32 %v588_v16, %v587_v15 }
 0x133   : > { %v590_v18 = vrot.slane %v589_v17, 1 }
 0x135   : > { %v591_v19 = vadd.f32 %v590_v18, %v589_v17 }
 0x137   : > { %592 = vst.msk [vmem:[%s214_s30] sm:$0x1] %vm579_vm4, %v591_v19 }
 0x138 PF: > { %s15_s15 = sadd.s32 1, %s898_s15  }
 0x139   : > { %p12_p4 = scmp.ge.s32.totalorder %s15_s15, 12  }
 0x13b   :  { %14 = sbr.rel (!%p12_p4) target bundleno = 1 (0x1), region = 84 }

// kernel: tile.42
= control target key start
LH: loop header
LB: loop body
LE: loop exit
PB: predicated region body
PF: predicated region fallthrough
CT: control target
= control target key end

     0   :  { %s28_s0 = inlined_call_operand.vmem [shape: f32[4], index: 0, kind: input, shape index: {}]   ;;  %s29_s1 = inlined_call_operand.vmem [shape: f32[16,4], index: 1, kind: output, shape index: {}]  }
   0x1   :  { %v4_v0 = vld [vmem:[%s28_s0] ss:$0 sm:$0xff] }
   0x2   :  { %5 = vst [vmem:[%s29_s1] sm:$0xff] %v4_v0  ;;  %8 = vst [vmem:[%s29_s1 + $0x8] sm:$0xff] %v4_v0 }

// kernel: tile.43
= control target key start
LH: loop header
LB: loop body
LE: loop exit
PB: predicated region body
PF: predicated region fallthrough
CT: control target
= control target key end

     0   :  { %s133_s10 = smov 60   ;;  %s134_s11 = smov 52   ;;  %vm3_vm0 = vcmask 31744   ;;  %vm9_vm1 = vcmask 523744   ;;  %vm15_vm2 = vcmask 490944   ;;  %vm21_vm3 = vcmask 458144   ;;  %s209_s0 = inlined_call_operand.vmem [shape: f32[16,4], index: 0, kind: input, shape index: {}]   ;;  %s210_s1 = inlined_call_operand.vmem [shape: f32[1,64], index: 1, kind: output, shape index: {}]  }
   0x1   :  { %v103_v0 = vld [vmem:[%s209_s0 + $0xf] sm:$0x1]   ;;  %v105_v1 = vld [vmem:[%s209_s0 + $0xd] sm:$0x1]   ;;  %v104_v2 = vld [vmem:[%s209_s0 + $0xe] sm:$0x1]  }
   0x2   :  { %7 = vrot.lane.b32.xlu0 %v103_v0, %s133_s10  ;;  %19 = vrot.lane.b32.xlu1 %v105_v1, %s134_s11  ;;  %v106_v3 = vld [vmem:[%s209_s0 + $0xc] sm:$0x1]   ;;  %s135_s16 = smov 56   ;;  %s136_s17 = smov 48   ;;  %v107_v4 = vld [vmem:[%s209_s0 + $0xb] sm:$0x1]  }
   0x3   :  { %v108_v5 = vld [vmem:[%s209_s0 + $0xa] sm:$0x1]   ;;  %v2_v6 = vld [vmem:[%s209_s0] sm:$0x1]   ;;  %s137_s24 = smov 44   ;;  %s138_s25 = smov 40  }
   0x4   :  { %4 = vst.msk [vmem:[#allocation0] sm:$0x1] %vm3_vm0, %v2_v6   ;;  %v109_v7 = vld [vmem:[%s209_s0 + $0x9] sm:$0x1]   ;;  %v110_v8 = vld [vmem:[%s209_s0 + $0x8] sm:$0x1]  }
   0x5   :  { %s139_s30 = smov 36   ;;  %s140_s2 = smov 32   ;;  %v111_v9 = vld [vmem:[%s209_s0 + $0x7] sm:$0x1]   ;;  %v112_v10 = vld [vmem:[%s209_s0 + $0x6] sm:$0x1]  }
   0x6   :  { %13 = vrot.lane.b32.xlu0 %v104_v2, %s135_s16  ;;  %25 = vrot.lane.b32.xlu1 %v106_v3, %s136_s17  ;;  %s141_s7 = smov 28   ;;  %s142_s8 = smov 24   ;;  %v113_v11 = vld [vmem:[%s209_s0 + $0x5] sm:$0x1]   ;;  %v114_v12 = vld [vmem:[%s209_s0 + $0x4] sm:$0x1]  }
   0x7   :  { %s143_s13 = smov 20   ;;  %s144_s14 = smov 16   ;;  %v115_v13 = vld [vmem:[%s209_s0 + $0x3] sm:$0x1]   ;;  %v116_v14 = vld [vmem:[%s209_s0 + $0x2] sm:$0x1]  }
   0x8   :  { %s145_s19 = smov 12   ;;  %s146_s20 = smov 8   ;;  %v117_v15 = vld [vmem:[%s209_s0 + $0x1] sm:$0x1]   ;;  %vm27_vm4 = vcmask 425344   ;;  %vm33_vm5 = vcmask 392544  }
   0x9   :  { %s147_s0 = smov 4   ;;  %vm39_vm6 = vcmask 359744   ;;  %vm45_vm7 = vcmask 326944   ;;  %vm51_vm8 = vcmask 294144   ;;  %vm57_vm9 = vcmask 261344  }
   0xa   :  { %31 = vrot.lane.b32.xlu0 %v107_v4, %s137_s24  ;;  %37 = vrot.lane.b32.xlu1 %v108_v5, %s138_s25  ;;  %vm63_vm10 = vcmask 228544   ;;  %vm69_vm11 = vcmask 195744   ;;  %vm75_vm12 = vcmask 162944   ;;  %vm81_vm13 = vcmask 130144  }
   0xb   :  { %vm87_vm14 = vcmask 97344   ;;  %vm93_vm15 = vcmask 64544  }
   0xe   :  { %43 = vrot.lane.b32.xlu0 %v109_v7, %s139_s30  ;;  %49 = vrot.lane.b32.xlu1 %v110_v8, %s140_s2 }
  0x12   :  { %55 = vrot.lane.b32.xlu0 %v111_v9, %s141_s7  ;;  %61 = vrot.lane.b32.xlu1 %v112_v10, %s142_s8 }
  0x16   :  { %67 = vrot.lane.b32.xlu0 %v113_v11, %s143_s13  ;;  %73 = vrot.lane.b32.xlu1 %v114_v12, %s144_s14 }
  0x1a   :  { %79 = vrot.lane.b32.xlu0 %v115_v13, %s145_s19  ;;  %85 = vrot.lane.b32.xlu1 %v116_v14, %s146_s20 }
  0x1e   :  { %91 = vrot.lane.b32.xlu0 %v117_v15, %s147_s0 }
  0x74   :  { %v8_v16 = vpop.permute.xlu0 %7   ;;  %v20_v17 = vpop.permute.xlu1 %19  }
  0x75   :  { %10 = vst.msk [vmem:[#allocation0] sm:$0x1] %vm9_vm1, %v8_v16  }
  0x78   :  { %v14_v18 = vpop.permute.xlu0 %13   ;;  %v26_v19 = vpop.permute.xlu1 %25  }
  0x79   :  { %16 = vst.msk [vmem:[#allocation0] sm:$0x1] %vm15_vm2, %v14_v18  }
  0x7a   :  { %22 = vst.msk [vmem:[#allocation0] sm:$0x1] %vm21_vm3, %v20_v17  }
  0x7b   :  { %28 = vst.msk [vmem:[#allocation0] sm:$0x1] %vm27_vm4, %v26_v19  }
  0x7c   :  { %v32_v20 = vpop.permute.xlu0 %31   ;;  %v38_v21 = vpop.permute.xlu1 %37  }
  0x7d   :  { %34 = vst.msk [vmem:[#allocation0] sm:$0x1] %vm33_vm5, %v32_v20  }
  0x7e   :  { %40 = vst.msk [vmem:[#allocation0] sm:$0x1] %vm39_vm6, %v38_v21  }
  0x80   :  { %v44_v22 = vpop.permute.xlu0 %43   ;;  %v50_v23 = vpop.permute.xlu1 %49  }
  0x81   :  { %46 = vst.msk [vmem:[#allocation0] sm:$0x1] %vm45_vm7, %v44_v22  }
  0x82   :  { %52 = vst.msk [vmem:[#allocation0] sm:$0x1] %vm51_vm8, %v50_v23  }
  0x84   :  { %v56_v24 = vpop.permute.xlu0 %55   ;;  %v62_v25 = vpop.permute.xlu1 %61  }
  0x85   :  { %58 = vst.msk [vmem:[#allocation0] sm:$0x1] %vm57_vm9, %v56_v24  }
  0x86   :  { %64 = vst.msk [vmem:[#allocation0] sm:$0x1] %vm63_vm10, %v62_v25  }
  0x88   :  { %v68_v26 = vpop.permute.xlu0 %67   ;;  %v74_v27 = vpop.permute.xlu1 %73  }
  0x89   :  { %70 = vst.msk [vmem:[#allocation0] sm:$0x1] %vm69_vm11, %v68_v26  }
  0x8a   :  { %76 = vst.msk [vmem:[#allocation0] sm:$0x1] %vm75_vm12, %v74_v27  }
  0x8c   :  { %v80_v28 = vpop.permute.xlu0 %79   ;;  %v86_v29 = vpop.permute.xlu1 %85  }
  0x8d   :  { %82 = vst.msk [vmem:[#allocation0] sm:$0x1] %vm81_vm13, %v80_v28  }
  0x8e   :  { %88 = vst.msk [vmem:[#allocation0] sm:$0x1] %vm87_vm14, %v86_v29  }
  0x90   :  { %v92_v30 = vpop.permute.xlu0 %91  }
  0x91   :  { %94 = vst.msk [vmem:[#allocation0] sm:$0x1] %vm93_vm15, %v92_v30  }
  0x98   :  { %v99_v31 = vld [vmem:[#allocation0] sm:$0x1] }
  0x99   :  { %102 = vst [vmem:[%s210_s1] sm:$0x1] %v99_v31 }

// kernel: basic_block_ms.10
= control target key start
LH: loop header
LB: loop body
LE: loop exit
PB: predicated region body
PF: predicated region fallthrough
CT: control target
= control target key end

     0   :  { %s568_s15 = smov 0   ;;  %s621_s0 = inlined_call_operand.vmem [shape: bf16[10,16,64], index: 0, kind: input, shape index: {}]   ;;  %s622_s1 = inlined_call_operand.vmem [shape: bf16[1,128,128], index: 1, kind: input, shape index: {}]   ;;  %s623_s2 = inlined_call_operand.vmem [shape: f32[10,16,128], index: 2, kind: output, shape index: {0}]   ;;  %s624_s3 = inlined_call_operand.vmem [shape: f32[10,1,128], index: 3, kind: output, shape index: {1}]   ;;  %s625_s4 = inlined_call_operand.vmem [shape: f32[10,1,128], index: 4, kind: output, shape index: {2}]  }
   0x1 LB: > { %s461_s16 = sadd.s32 4294967295, %s539_s15   ;;  %p465_p0 = scmp.ge.s32.totalorder %s539_s15, 1  ;;  %s539_s15 = sphi %s568_s15, %s15_s15  }
   0x2   : > { %p167_p1 = scmp.lt.s32.totalorder %s539_s15, 11 }
   0x4   : > { %p168_p2 = pnand %p465_p0, %p167_p1 }
   0x5   : > { %p199_p3 = scmp.lt.s32.totalorder (!%p168_p2), %s461_s16, 9 }
   0x6   : > { %171 = sbr.rel (%p168_p2) target bundleno = 276 (0x114), region = 28 }
   0xb   : > { %v525_v0 = vld [vmem:[%s622_s1 + $0x38] sm:$0xff]   ;;  %v541_v1 = vmov 0.0   ;;  %v526_v2 = vld [vmem:[%s622_s1 + $0x30] sm:$0xff]   ;;  %vm542_vm0 = vmmov 0   ;;  %s627_s16 = smov (!%p199_p3, %s461_s16), 9  ;;  %v527_v3 = vld [vmem:[%s622_s1 + $0x28] sm:$0xff]  }
   0xc   : > { %495 = vmatprep.subr.bf16.mxu0 %v541_v1  ;;  %216 = vst [vmem:[#allocation2] sm:$0xff] %v541_v1  ;;  %217 = vst [vmem:[#allocation2 + $0x8] sm:$0xff] %v541_v1  ;;  %511 = vmatprep.mubr.msk.bf16.mxu0 %vm542_vm0, %v541_v1  ;;  %s480_s23 = sshll.u32 %s627_s16, 3  ;;  %vm222_vm1 = vcmask 523264   ;;  %v528_v7 = vld [vmem:[%s622_s1 + $0x20] sm:$0xff]   ;;  %v529_v8 = vld [vmem:[%s622_s1 + $0x18] sm:$0xff]   ;;  %s211_s19 = scalar_lea.vmem %s624_s3, %s627_s16 }
   0xd   : > { %496 = vmatpush3.bf16.msra.mxu0 %v525_v0  ;;  %s203_s26 = scalar_lea.vmem %s621_s0, %s480_s23  ;;  %v530_v9 = vld [vmem:[%s622_s1 + $0x10] sm:$0xff]   ;;  %v531_v10 = vld [vmem:[%s622_s1 + $0x8] sm:$0xff]   ;;  %v532_v11 = vld [vmem:[%s622_s1] sm:$0xff]   ;;  %s481_s11 = sshll.u32 %s627_s16, 4 }
   0xe   : > { %497 = vmatprep.subr.bf16.mxu0 %v541_v1  ;;  %v483_v4 = vld [vmem:[%s203_s26] sm:$0xff]   ;;  %s208_s14 = scalar_lea.vmem %s623_s2, %s481_s11  ;;  %s214_s22 = scalar_lea.vmem %s625_s4, %s627_s16 }
   0xf   : > { %v484_v5 = vunpack.c.l.bf16 %v483_v4  ;;  %v485_v6 = vunpack.c.h.bf16 %v483_v4 }
  0x11   : > { %498 = vmatpush3.bf16.msra.mxu0 %v526_v2  ;;  %223 = vst.msk [vmem:[#allocation2] sm:$0xff] %vm222_vm1, %v484_v5  ;;  %224 = vst.msk [vmem:[#allocation2 + $0x8] sm:$0xff] %vm222_vm1, %v485_v6 }
  0x12   : > { %499 = vmatprep.subr.bf16.mxu0 %v541_v1 }
  0x15   : > { %500 = vmatpush3.bf16.msra.mxu0 %v527_v3 }
  0x16   : > { %501 = vmatprep.subr.bf16.mxu0 %v541_v1 }
  0x18   : > { %v225_v12 = vld [vmem:[#allocation2] sm:$0xff]  ;;  %v226_v13 = vld [vmem:[#allocation2 + $0x8] sm:$0xff] }
  0x19   : > { %502 = vmatpush3.bf16.msra.mxu0 %v528_v7  ;;  %v227_v14 = vpack.c.bf16 %v226_v13, %v225_v12 }
  0x1a   : > { %503 = vmatprep.subr.bf16.mxu0 %v541_v1 }
  0x1d   : > { %504 = vmatpush3.bf16.msra.mxu0 %v529_v8 }
  0x1e   : > { %505 = vmatprep.subr.bf16.mxu0 %v541_v1 }
  0x21   : > { %506 = vmatpush3.bf16.msra.mxu0 %v530_v9 }
  0x22   : > { %507 = vmatprep.subr.bf16.mxu0 %v541_v1 }
  0x25   : > { %508 = vmatpush3.bf16.msra.mxu0 %v531_v10 }
  0x26   : > { %509 = vmatprep.subr.bf16.mxu0 %v541_v1 }
  0x29   : > { %510 = vmatpush3.bf16.msra.mxu0 %v532_v11 }
  0x2c   : > { %512 = vmatmul.mubr.bf16.vlgmr.msra.gmra.mxu0 %v227_v14 }
  0xec   : > { %v326_v15 = vpop.f32.mrf.mxu0 }
  0xed   : > { %333 = vst [vmem:[%s208_s14] sm:$0xff] %v326_v15 }
  0xee   : > { %v513_v16 = vpop.f32.mrf.mxu0 }
  0xf0   : > { %v329_v17 = vpop.f32.mrf.mxu0 }
  0xf1   : > { %334 = vst [vmem:[%s208_s14 + $0x8] sm:$0xff] %v329_v17  ;;  %v335_v18 = vadd.f32 %v329_v17, %v326_v15 }
  0xf2   : > { %v514_v19 = vpop.f32.mrf.mxu0 }
  0xf3   : > { %v336_v20 = vrot.slane %v335_v18, 4 }
  0xf5   : > { %v337_v21 = vadd.f32 %v336_v20, %v335_v18 }
  0xf7   : > { %v338_v22 = vrot.slane %v337_v21, 2 }
  0xf9   : > { %v339_v23 = vadd.f32 %v338_v22, %v337_v21 }
  0xfb   : > { %v340_v24 = vrot.slane %v339_v23, 1 }
  0xfd   : > { %v341_v25 = vadd.f32 %v340_v24, %v339_v23 }
  0xff   : > { %v342_v26 = vmul.f32 0.0625, %v341_v25  ;;  %345 = vst [vmem:[%s211_s19] sm:$0x1] %v341_v25 }
 0x101   : > { %v343_v27 = vsub.f32 %v326_v15, %v342_v26  ;;  %v344_v28 = vsub.f32 %v329_v17, %v342_v26 }
 0x103   : > { %v346_v29 = vmul.f32 %v343_v27, %v343_v27  ;;  %v347_v30 = vmul.f32 %v344_v28, %v344_v28 }
 0x105   : > { %v348_v31 = vadd.f32 %v347_v30, %v346_v29 }
 0x107   : > { %v349_v32 = vrot.slane %v348_v31, 4 }
 0x109   : > { %v350_v33 = vadd.f32 %v349_v32, %v348_v31 }
 0x10b   : > { %v351_v34 = vrot.slane %v350_v33, 2 }
 0x10d   : > { %v352_v35 = vadd.f32 %v351_v34, %v350_v33 }
 0x10f   : > { %v353_v36 = vrot.slane %v352_v35, 1 }
 0x111   : > { %v354_v37 = vadd.f32 %v353_v36, %v352_v35 }
 0x113   : > { %355 = vst [vmem:[%s214_s22] sm:$0x1] %v354_v37 }
 0x114 PF: > { %s15_s15 = sadd.s32 1, %s539_s15  }
 0x115   : > { %p12_p4 = scmp.ge.s32.totalorder %s15_s15, 12  }
 0x117   :  { %14 = sbr.rel (!%p12_p4) target bundleno = 1 (0x1), region = 82 }

// kernel: tile.62
= control target key start
LH: loop header
LB: loop body
LE: loop exit
PB: predicated region body
PF: predicated region fallthrough
CT: control target
= control target key end

     0   :  { %s28_s0 = inlined_call_operand.vmem [shape: f32[8], index: 0, kind: input, shape index: {}]   ;;  %s29_s1 = inlined_call_operand.vmem [shape: f32[16,8], index: 1, kind: output, shape index: {}]  }
   0x1   :  { %v4_v0 = vld [vmem:[%s28_s0] ss:$0 sm:$0xff] }
   0x2   :  { %5 = vst [vmem:[%s29_s1] sm:$0xff] %v4_v0  ;;  %8 = vst [vmem:[%s29_s1 + $0x8] sm:$0xff] %v4_v0 }

// kernel: tile.63
= control target key start
LH: loop header
LB: loop body
LE: loop exit
PB: predicated region body
PF: predicated region fallthrough
CT: control target
= control target key end

     0   :  { %s133_s10 = smov 120   ;;  %s134_s11 = smov 104   ;;  %vm3_vm0 = vcmask 64512   ;;  %vm9_vm1 = vcmask 1048512   ;;  %vm15_vm2 = vcmask 982912   ;;  %vm21_vm3 = vcmask 917312   ;;  %s209_s0 = inlined_call_operand.vmem [shape: f32[16,8], index: 0, kind: input, shape index: {}]   ;;  %s210_s1 = inlined_call_operand.vmem [shape: f32[1,128], index: 1, kind: output, shape index: {}]  }
   0x1   :  { %v103_v0 = vld [vmem:[%s209_s0 + $0xf] sm:$0x1]   ;;  %v105_v1 = vld [vmem:[%s209_s0 + $0xd] sm:$0x1]   ;;  %v104_v2 = vld [vmem:[%s209_s0 + $0xe] sm:$0x1]  }
   0x2   :  { %7 = vrot.lane.b32.xlu0 %v103_v0, %s133_s10  ;;  %19 = vrot.lane.b32.xlu1 %v105_v1, %s134_s11  ;;  %v106_v3 = vld [vmem:[%s209_s0 + $0xc] sm:$0x1]   ;;  %s135_s16 = smov 112   ;;  %s136_s17 = smov 96   ;;  %v107_v4 = vld [vmem:[%s209_s0 + $0xb] sm:$0x1]  }
   0x3   :  { %v108_v5 = vld [vmem:[%s209_s0 + $0xa] sm:$0x1]   ;;  %v2_v6 = vld [vmem:[%s209_s0] sm:$0x1]   ;;  %s137_s24 = smov 88   ;;  %s138_s25 = smov 80  }
   0x4   :  { %4 = vst.msk [vmem:[#allocation0] sm:$0x1] %vm3_vm0, %v2_v6   ;;  %v109_v7 = vld [vmem:[%s209_s0 + $0x9] sm:$0x1]   ;;  %v110_v8 = vld [vmem:[%s209_s0 + $0x8] sm:$0x1]  }
   0x5   :  { %s139_s30 = smov 72   ;;  %s140_s2 = smov 64   ;;  %v111_v9 = vld [vmem:[%s209_s0 + $0x7] sm:$0x1]   ;;  %v112_v10 = vld [vmem:[%s209_s0 + $0x6] sm:$0x1]  }
   0x6   :  { %13 = vrot.lane.b32.xlu0 %v104_v2, %s135_s16  ;;  %25 = vrot.lane.b32.xlu1 %v106_v3, %s136_s17  ;;  %s141_s7 = smov 56   ;;  %s142_s8 = smov 48   ;;  %v113_v11 = vld [vmem:[%s209_s0 + $0x5] sm:$0x1]   ;;  %v114_v12 = vld [vmem:[%s209_s0 + $0x4] sm:$0x1]  }
   0x7   :  { %s143_s13 = smov 40   ;;  %s144_s14 = smov 32   ;;  %v115_v13 = vld [vmem:[%s209_s0 + $0x3] sm:$0x1]   ;;  %v116_v14 = vld [vmem:[%s209_s0 + $0x2] sm:$0x1]  }
   0x8   :  { %s145_s19 = smov 24   ;;  %s146_s20 = smov 16   ;;  %v117_v15 = vld [vmem:[%s209_s0 + $0x1] sm:$0x1]   ;;  %vm27_vm4 = vcmask 851712   ;;  %vm33_vm5 = vcmask 786112  }
   0x9   :  { %s147_s0 = smov 8   ;;  %vm39_vm6 = vcmask 720512   ;;  %vm45_vm7 = vcmask 654912   ;;  %vm51_vm8 = vcmask 589312   ;;  %vm57_vm9 = vcmask 523712  }
   0xa   :  { %31 = vrot.lane.b32.xlu0 %v107_v4, %s137_s24  ;;  %37 = vrot.lane.b32.xlu1 %v108_v5, %s138_s25  ;;  %vm63_vm10 = vcmask 458112   ;;  %vm69_vm11 = vcmask 392512   ;;  %vm75_vm12 = vcmask 326912   ;;  %vm81_vm13 = vcmask 261312  }
   0xb   :  { %vm87_vm14 = vcmask 195712   ;;  %vm93_vm15 = vcmask 130112  }
   0xe   :  { %43 = vrot.lane.b32.xlu0 %v109_v7, %s139_s30  ;;  %49 = vrot.lane.b32.xlu1 %v110_v8, %s140_s2 }
  0x12   :  { %55 = vrot.lane.b32.xlu0 %v111_v9, %s141_s7  ;;  %61 = vrot.lane.b32.xlu1 %v112_v10, %s142_s8 }
  0x16   :  { %67 = vrot.lane.b32.xlu0 %v113_v11, %s143_s13  ;;  %73 = vrot.lane.b32.xlu1 %v114_v12, %s144_s14 }
  0x1a   :  { %79 = vrot.lane.b32.xlu0 %v115_v13, %s145_s19  ;;  %85 = vrot.lane.b32.xlu1 %v116_v14, %s146_s20 }
  0x1e   :  { %91 = vrot.lane.b32.xlu0 %v117_v15, %s147_s0 }
  0x74   :  { %v8_v16 = vpop.permute.xlu0 %7   ;;  %v20_v17 = vpop.permute.xlu1 %19  }
  0x75   :  { %10 = vst.msk [vmem:[#allocation0] sm:$0x1] %vm9_vm1, %v8_v16  }
  0x78   :  { %v14_v18 = vpop.permute.xlu0 %13   ;;  %v26_v19 = vpop.permute.xlu1 %25  }
  0x79   :  { %16 = vst.msk [vmem:[#allocation0] sm:$0x1] %vm15_vm2, %v14_v18  }
  0x7a   :  { %22 = vst.msk [vmem:[#allocation0] sm:$0x1] %vm21_vm3, %v20_v17  }
  0x7b   :  { %28 = vst.msk [vmem:[#allocation0] sm:$0x1] %vm27_vm4, %v26_v19  }
  0x7c   :  { %v32_v20 = vpop.permute.xlu0 %31   ;;  %v38_v21 = vpop.permute.xlu1 %37  }
  0x7d   :  { %34 = vst.msk [vmem:[#allocation0] sm:$0x1] %vm33_vm5, %v32_v20  }
  0x7e   :  { %40 = vst.msk [vmem:[#allocation0] sm:$0x1] %vm39_vm6, %v38_v21  }
  0x80   :  { %v44_v22 = vpop.permute.xlu0 %43   ;;  %v50_v23 = vpop.permute.xlu1 %49  }
  0x81   :  { %46 = vst.msk [vmem:[#allocation0] sm:$0x1] %vm45_vm7, %v44_v22  }
  0x82   :  { %52 = vst.msk [vmem:[#allocation0] sm:$0x1] %vm51_vm8, %v50_v23  }
  0x84   :  { %v56_v24 = vpop.permute.xlu0 %55   ;;  %v62_v25 = vpop.permute.xlu1 %61  }
  0x85   :  { %58 = vst.msk [vmem:[#allocation0] sm:$0x1] %vm57_vm9, %v56_v24  }
  0x86   :  { %64 = vst.msk [vmem:[#allocation0] sm:$0x1] %vm63_vm10, %v62_v25  }
  0x88   :  { %v68_v26 = vpop.permute.xlu0 %67   ;;  %v74_v27 = vpop.permute.xlu1 %73  }
  0x89   :  { %70 = vst.msk [vmem:[#allocation0] sm:$0x1] %vm69_vm11, %v68_v26  }
  0x8a   :  { %76 = vst.msk [vmem:[#allocation0] sm:$0x1] %vm75_vm12, %v74_v27  }
  0x8c   :  { %v80_v28 = vpop.permute.xlu0 %79   ;;  %v86_v29 = vpop.permute.xlu1 %85  }
  0x8d   :  { %82 = vst.msk [vmem:[#allocation0] sm:$0x1] %vm81_vm13, %v80_v28  }
  0x8e   :  { %88 = vst.msk [vmem:[#allocation0] sm:$0x1] %vm87_vm14, %v86_v29  }
  0x90   :  { %v92_v30 = vpop.permute.xlu0 %91  }
  0x91   :  { %94 = vst.msk [vmem:[#allocation0] sm:$0x1] %vm93_vm15, %v92_v30  }
  0x98   :  { %v99_v31 = vld [vmem:[#allocation0] sm:$0x1] }
  0x99   :  { %102 = vst [vmem:[%s210_s1] sm:$0x1] %v99_v31 }

// kernel: basic_block_ms.9
= control target key start
LH: loop header
LB: loop body
LE: loop exit
PB: predicated region body
PF: predicated region fallthrough
CT: control target
= control target key end

     0   :  { %s922_s15 = smov 0   ;;  %s1057_s0 = inlined_call_operand.vmem [shape: bf16[10,16,64], index: 0, kind: input, shape index: {}]   ;;  %s1058_s1 = inlined_call_operand.vmem [shape: bf16[3,128,128], index: 1, kind: input, shape index: {}]   ;;  %s1059_s2 = inlined_call_operand.vmem [shape: f32[10,16,128], index: 2, kind: output, shape index: {0}]   ;;  %s1060_s3 = inlined_call_operand.vmem [shape: f32[10,1,128], index: 3, kind: output, shape index: {1}]   ;;  %s1061_s4 = inlined_call_operand.vmem [shape: f32[10,1,128], index: 4, kind: output, shape index: {2}]  }
   0x1 LB: > { %s693_s16 = sadd.s32 4294967295, %s893_s15   ;;  %p697_p0 = scmp.ge.s32.totalorder %s893_s15, 1  ;;  %s893_s15 = sphi %s922_s15, %s15_s15  }
   0x2   : > { %p167_p1 = scmp.lt.s32.totalorder %s893_s15, 11 }
   0x4   : > { %p168_p2 = pnand %p697_p0, %p167_p1 }
   0x5   : > { %p199_p3 = scmp.lt.s32.totalorder (!%p168_p2), %s693_s16, 9 }
   0x6   : > { %171 = sbr.rel (%p168_p2) target bundleno = 310 (0x136), region = 28 }
   0xb   : > { %v863_v0 = vld [vmem:[%s1058_s1 + $0x78] sm:$0xff]   ;;  %v895_v1 = vmov 0.0   ;;  %v865_v3 = vld [vmem:[%s1058_s1 + $0x70] sm:$0xff]   ;;  %vm896_vm0 = vmmov 0   ;;  %v867_v5 = vld [vmem:[%s1058_s1 + $0x68] sm:$0xff]   ;;  %s1063_s16 = smov (!%p199_p3, %s693_s16), 9  ;;  %v232_v15 = vlaneseq }
   0xc   : > { %793 = vmatprep.subr.bf16.mxu0 %v895_v1  ;;  %216 = vst [vmem:[#allocation2] sm:$0xff] %v895_v1  ;;  %217 = vst [vmem:[#allocation2 + $0x8] sm:$0xff] %v895_v1  ;;  %813 = vmatprep.subr.bf16.mxu1 %v895_v1  ;;  %v864_v2 = vld [vmem:[%s1058_s1 + $0x38] sm:$0xff]   ;;  %v866_v4 = vld [vmem:[%s1058_s1 + $0x30] sm:$0xff]   ;;  %s760_s5 = sshll.u32 %s1063_s16, 3  ;;  %vm223_vm1 = vcmask 523264   ;;  %s211_s27 = scalar_lea.vmem %s1060_s3, %s1063_s16 }
   0xd   : > { %794 = vmatpush3.bf16.msra.mxu0 %v863_v0  ;;  %809 = vmatprep.mubr.msk.bf16.mxu0 %vm896_vm0, %v895_v1  ;;  %v868_v6 = vld [vmem:[%s1058_s1 + $0x28] sm:$0xff]   ;;  %v869_v7 = vld [vmem:[%s1058_s1 + $0x60] sm:$0xff]   ;;  %s203_s10 = scalar_lea.vmem %s1057_s0, %s760_s5  ;;  %v871_v9 = vld [vmem:[%s1058_s1 + $0x58] sm:$0xff]   ;;  %v233_v18 = vshrl.u32 %v232_v15, 7  ;;  %v231_v20 = vrot.slane %v895_v1, 7  ;;  %v452_v39 = vrot.slane %v895_v1, 1  ;;  %s214_s30 = scalar_lea.vmem %s1061_s4, %s1063_s16 }
   0xe   : > { %814 = vmatpush3.bf16.msra.mxu1 %v864_v2  ;;  %795 = vmatprep.subr.bf16.mxu0 %v895_v1  ;;  %v870_v8 = vld [vmem:[%s1058_s1 + $0x20] sm:$0xff]   ;;  %v872_v10 = vld [vmem:[%s1058_s1 + $0x18] sm:$0xff]   ;;  %v873_v14 = vld [vmem:[%s1058_s1 + $0x50] sm:$0xff]   ;;  %s761_s21 = sshll.u32 %s1063_s16, 4 }
   0xf   : > { %815 = vmatprep.subr.bf16.mxu1 %v895_v1  ;;  %829 = vmatprep.mubr.msk.bf16.mxu1 %vm896_vm0, %v895_v1  ;;  %v763_v11 = vld [vmem:[%s203_s10] sm:$0xff]   ;;  %v874_v16 = vld [vmem:[%s1058_s1 + $0x10] sm:$0xff]   ;;  %v875_v17 = vld [vmem:[%s1058_s1 + $0x48] sm:$0xff]   ;;  %vm234_vm2 = vcmp.lt.s32.totalorder %v233_v18, 1  ;;  %vm453_vm3 = vcmp.lt.s32.totalorder %v233_v18, 7  ;;  %s208_s24 = scalar_lea.vmem %s1059_s2, %s761_s21 }
  0x10   : > { %v764_v12 = vunpack.c.l.bf16 %v763_v11  ;;  %v765_v13 = vunpack.c.h.bf16 %v763_v11  ;;  %v876_v19 = vld [vmem:[%s1058_s1 + $0x8] sm:$0xff]   ;;  %v877_v21 = vld [vmem:[%s1058_s1 + $0x40] sm:$0xff]   ;;  %v879_v31 = vld [vmem:[%s1058_s1 + $0xb8] sm:$0xff]  }
  0x11   : > { %796 = vmatpush3.bf16.msra.mxu0 %v865_v3  ;;  %v878_v24 = vld [vmem:[%s1058_s1] sm:$0xff]   ;;  %v880_v32 = vld [vmem:[%s1058_s1 + $0xb0] sm:$0xff]   ;;  %v881_v33 = vld [vmem:[%s1058_s1 + $0xa8] sm:$0xff]  }
  0x12   : > { %816 = vmatpush3.bf16.msra.mxu1 %v866_v4  ;;  %797 = vmatprep.subr.bf16.mxu0 %v895_v1  ;;  %224 = vst.msk [vmem:[#allocation2] sm:$0xff] %vm223_vm1, %v764_v12  ;;  %225 = vst.msk [vmem:[#allocation2 + $0x8] sm:$0xff] %vm223_vm1, %v765_v13  ;;  %v882_v34 = vld [vmem:[%s1058_s1 + $0xa0] sm:$0xff]   ;;  %v883_v35 = vld [vmem:[%s1058_s1 + $0x98] sm:$0xff]  }
  0x13   : > { %817 = vmatprep.subr.bf16.mxu1 %v895_v1  ;;  %v884_v36 = vld [vmem:[%s1058_s1 + $0x90] sm:$0xff]   ;;  %v885_v40 = vld [vmem:[%s1058_s1 + $0x88] sm:$0xff]   ;;  %v886_v41 = vld [vmem:[%s1058_s1 + $0x80] sm:$0xff]  }
  0x15   : > { %798 = vmatpush3.bf16.msra.mxu0 %v867_v5 }
  0x16   : > { %818 = vmatpush3.bf16.msra.mxu1 %v868_v6  ;;  %799 = vmatprep.subr.bf16.mxu0 %v895_v1 }
  0x17   : > { %819 = vmatprep.subr.bf16.mxu1 %v895_v1 }
  0x19   : > { %800 = vmatpush3.bf16.msra.mxu0 %v869_v7  ;;  %v226_v22 = vld [vmem:[#allocation2] sm:$0xff]  ;;  %v227_v23 = vld [vmem:[#allocation2 + $0x8] sm:$0xff] }
  0x1a   : > { %820 = vmatpush3.bf16.msra.mxu1 %v870_v8  ;;  %801 = vmatprep.subr.bf16.mxu0 %v895_v1  ;;  %v229_v25 = vrot.slane %v226_v22, 7  ;;  %v230_v26 = vrot.slane %v227_v23, 7  ;;  %v254_v27 = vpack.c.bf16 %v227_v23, %v226_v22  ;;  %v450_v37 = vrot.slane %v226_v22, 1 }
  0x1b   : > { %821 = vmatprep.subr.bf16.mxu1 %v895_v1  ;;  %v451_v38 = vrot.slane %v227_v23, 1 }
  0x1c   : > { %v235_v28 = vsel %vm234_vm2, %v229_v25, %v230_v26  ;;  %v236_v29 = vsel %vm234_vm2, %v231_v20, %v229_v25 }
  0x1d   : > { %802 = vmatpush3.bf16.msra.mxu0 %v871_v9  ;;  %v237_v30 = vpack.c.bf16 %v235_v28, %v236_v29  ;;  %v454_v42 = vsel %vm453_vm3, %v451_v38, %v452_v39  ;;  %v455_v43 = vsel %vm453_vm3, %v450_v37, %v451_v38 }
  0x1e   : > { %822 = vmatpush3.bf16.msra.mxu1 %v872_v10  ;;  %803 = vmatprep.subr.bf16.mxu0 %v895_v1  ;;  %v456_v44 = vpack.c.bf16 %v454_v42, %v455_v43 }
  0x1f   : > { %823 = vmatprep.subr.bf16.mxu1 %v895_v1 }
  0x21   : > { %804 = vmatpush3.bf16.msra.mxu0 %v873_v14 }
  0x22   : > { %824 = vmatpush3.bf16.msra.mxu1 %v874_v16  ;;  %805 = vmatprep.subr.bf16.mxu0 %v895_v1 }
  0x23   : > { %825 = vmatprep.subr.bf16.mxu1 %v895_v1 }
  0x25   : > { %806 = vmatpush3.bf16.msra.mxu0 %v875_v17 }
  0x26   : > { %826 = vmatpush3.bf16.msra.mxu1 %v876_v19  ;;  %807 = vmatprep.subr.bf16.mxu0 %v895_v1 }
  0x27   : > { %827 = vmatprep.subr.bf16.mxu1 %v895_v1 }
  0x29   : > { %808 = vmatpush3.bf16.msra.mxu0 %v877_v21 }
  0x2a   : > { %828 = vmatpush3.bf16.msra.mxu1 %v878_v24  ;;  %833 = vmatprep.subr.bf16.mxu0 %v895_v1 }
  0x2c   : > { %810 = vmatmul.mubr.bf16.vlgmr.msra.gmra.mxu0 %v254_v27 }
  0x2d   : > { %830 = vmatmul.mubr.bf16.vlgmr.msra.gmra.mxu1 %v237_v30  ;;  %834 = vmatpush3.bf16.msra.mxu0 %v879_v31 }
  0x2e   : > { %835 = vmatprep.subr.bf16.mxu0 %v895_v1  ;;  %849 = vmatprep.mubr.msk.bf16.mxu0 %vm896_vm0, %v895_v1 }
  0x31   : > { %836 = vmatpush3.bf16.msra.mxu0 %v880_v32 }
  0x32   : > { %837 = vmatprep.subr.bf16.mxu0 %v895_v1 }
  0x35   : > { %838 = vmatpush3.bf16.msra.mxu0 %v881_v33 }
  0x36   : > { %839 = vmatprep.subr.bf16.mxu0 %v895_v1 }
  0x39   : > { %840 = vmatpush3.bf16.msra.mxu0 %v882_v34 }
  0x3a   : > { %841 = vmatprep.subr.bf16.mxu0 %v895_v1 }
  0x3d   : > { %842 = vmatpush3.bf16.msra.mxu0 %v883_v35 }
  0x3e   : > { %843 = vmatprep.subr.bf16.mxu0 %v895_v1 }
  0x41   : > { %844 = vmatpush3.bf16.msra.mxu0 %v884_v36 }
  0x42   : > { %845 = vmatprep.subr.bf16.mxu0 %v895_v1 }
  0x45   : > { %846 = vmatpush3.bf16.msra.mxu0 %v885_v40 }
  0x46   : > { %847 = vmatprep.subr.bf16.mxu0 %v895_v1 }
  0x49   : > { %848 = vmatpush3.bf16.msra.mxu0 %v886_v41 }
  0x4c   : > { %850 = vmatmul.mubr.bf16.vlgmr.msra.gmra.mxu0 %v456_v44 }
  0xec   : > { %v354_v45 = vpop.f32.mrf.mxu0 }
  0xed   : > { %v443_v46 = vpop.f32.mrf.mxu1 }
  0xee   : > { %v811_v47 = vpop.f32.mrf.mxu0  ;;  %v444_v53 = vadd.f32 %v443_v46, %v354_v45 }
  0xef   : > { %v831_v48 = vpop.f32.mrf.mxu1 }
  0xf0   : > { %v357_v49 = vpop.f32.mrf.mxu0 }
  0xf1   : > { %v446_v50 = vpop.f32.mrf.mxu1 }
  0xf2   : > { %v812_v51 = vpop.f32.mrf.mxu0  ;;  %v447_v57 = vadd.f32 %v446_v50, %v357_v49 }
  0xf3   : > { %v832_v52 = vpop.f32.mrf.mxu1 }
 0x10c   : > { %v556_v54 = vpop.f32.mrf.mxu0 }
 0x10d   : > { %v563_v55 = vadd.f32 %v556_v54, %v444_v53 }
 0x10e   : > { %v851_v56 = vpop.f32.mrf.mxu0 }
 0x10f   : > { %565 = vst [vmem:[%s208_s24] sm:$0xff] %v563_v55 }
 0x110   : > { %v559_v58 = vpop.f32.mrf.mxu0 }
 0x111   : > { %v564_v59 = vadd.f32 %v559_v58, %v447_v57 }
 0x112   : > { %v852_v60 = vpop.f32.mrf.mxu0 }
 0x113   : > { %566 = vst [vmem:[%s208_s24 + $0x8] sm:$0xff] %v564_v59  ;;  %v567_v61 = vadd.f32 %v564_v59, %v563_v55 }
 0x115   : > { %v568_v62 = vrot.slane %v567_v61, 4 }
 0x117   : > { %v569_v63 = vadd.f32 %v568_v62, %v567_v61 }
 0x119   : > { %v570_v0 = vrot.slane %v569_v63, 2 }
 0x11b   : > { %v571_v1 = vadd.f32 %v570_v0, %v569_v63 }
 0x11d   : > { %v572_v2 = vrot.slane %v571_v1, 1 }
 0x11f   : > { %v573_v3 = vadd.f32 %v572_v2, %v571_v1 }
 0x121   : > { %v574_v4 = vmul.f32 0.0625, %v573_v3  ;;  %577 = vst [vmem:[%s211_s27] sm:$0x1] %v573_v3 }
 0x123   : > { %v575_v5 = vsub.f32 %v563_v55, %v574_v4  ;;  %v576_v6 = vsub.f32 %v564_v59, %v574_v4 }
 0x125   : > { %v578_v7 = vmul.f32 %v575_v5, %v575_v5  ;;  %v579_v8 = vmul.f32 %v576_v6, %v576_v6 }
 0x127   : > { %v580_v9 = vadd.f32 %v579_v8, %v578_v7 }
 0x129   : > { %v581_v10 = vrot.slane %v580_v9, 4 }
 0x12b   : > { %v582_v11 = vadd.f32 %v581_v10, %v580_v9 }
 0x12d   : > { %v583_v12 = vrot.slane %v582_v11, 2 }
 0x12f   : > { %v584_v13 = vadd.f32 %v583_v12, %v582_v11 }
 0x131   : > { %v585_v14 = vrot.slane %v584_v13, 1 }
 0x133   : > { %v586_v15 = vadd.f32 %v585_v14, %v584_v13 }
 0x135   : > { %587 = vst [vmem:[%s214_s30] sm:$0x1] %v586_v15 }
 0x136 PF: > { %s15_s15 = sadd.s32 1, %s893_s15  }
 0x137   : > { %p12_p4 = scmp.ge.s32.totalorder %s15_s15, 12  }
 0x139   :  { %14 = sbr.rel (!%p12_p4) target bundleno = 1 (0x1), region = 84 }

// kernel: basic_block_ms.11
= control target key start
LH: loop header
LB: loop body
LE: loop exit
PB: predicated region body
PF: predicated region fallthrough
CT: control target
= control target key end

     0   :  { %s478_s21 = smov 0   ;;  %s515_s0 = inlined_call_operand.vmem [shape: f32[160,128], index: 0, kind: input, shape index: {}, may-alias: {0,6}]   ;;  %s516_s1 = inlined_call_operand.vmem [shape: f32[160,128], index: 1, kind: input, shape index: {}]   ;;  %s517_s2 = inlined_call_operand.vmem [shape: f32[1,128], index: 2, kind: input, shape index: {}]   ;;  %s518_s3 = inlined_call_operand.vmem [shape: f32[1,128], index: 3, kind: input, shape index: {}]   ;;  %s519_s4 = inlined_call_operand.vmem [shape: f32[1,128], index: 4, kind: input, shape index: {}]   ;;  %s520_s5 = inlined_call_operand.vmem [shape: f32[1,128], index: 5, kind: input, shape index: {}]   ;;  %s521_s6 = inlined_call_operand.vmem [shape: f32[160,128], index: 6, kind: output, shape index: {}, may-alias: {0,6}]  }
   0x1 LB: > { %s413_s22 = sadd.s32 4294967295, %s441_s21   ;;  %p417_p0 = scmp.ge.s32.totalorder %s441_s21, 1  ;;  %s441_s21 = sphi %s478_s21, %s16_s21  }
   0x2   : > { %p224_p1 = scmp.lt.s32.totalorder %s441_s21, 5 }
   0x4   : > { %p225_p2 = pnand %p417_p0, %p224_p1 }
   0x5   : > { %s259_s23 = smul.u32 (!%p225_p2), 5, %s413_s22 }
   0x6   : > { %228 = sbr.rel (%p225_p2) target bundleno = 26 (0x1a), region = 44 }
   0x7   : > { %p260_p3 = scmp.lt.s32.totalorder (!%p225_p2), %s259_s23, 19 }
   0xb   : > { %s523_s23 = smov (!%p260_p3, %s259_s23), 19  ;;  %v421_v0 = vld [vmem:[%s517_s2] ss:$0 sm:$0xff] }
   0xc   : > { %s486_s24 = sshll.u32 %s523_s23, 3  ;;  %v422_v1 = vld [vmem:[%s518_s3] ss:$0 sm:$0xff] }
   0xd   : > { %s263_s29 = scalar_lea.vmem %s515_s0, %s486_s24  ;;  %s269_s8 = scalar_lea.vmem %s516_s1, %s486_s24  ;;  %v423_v2 = vld [vmem:[%s519_s4] ss:$0 sm:$0xff] }
   0xe   : > { %v277_v3 = vld [vmem:[%s263_s29] sm:$0xff]  ;;  %v278_v4 = vld [vmem:[%s263_s29 + $0x8] sm:$0xff]  ;;  %v279_v5 = vld [vmem:[%s263_s29 + $0x10] sm:$0xff]  ;;  %s275_s17 = scalar_lea.vmem %s521_s6, %s486_s24 }
   0xf   : > { %v280_v6 = vld [vmem:[%s263_s29 + $0x18] sm:$0xff]  ;;  %v281_v7 = vld [vmem:[%s263_s29 + $0x20] sm:$0xff]  ;;  %v289_v8 = vmul.f32 %v421_v0, %v277_v3  ;;  %v290_v9 = vmul.f32 %v421_v0, %v278_v4  ;;  %v291_v10 = vmul.f32 %v421_v0, %v279_v5  ;;  %v307_v14 = vld [vmem:[%s269_s8 + $0x8] sm:$0xff] }
  0x10   : > { %v306_v11 = vld [vmem:[%s269_s8] sm:$0xff]  ;;  %v292_v12 = vmul.f32 %v421_v0, %v280_v6  ;;  %v293_v13 = vmul.f32 %v421_v0, %v281_v7  ;;  %v308_v15 = vld [vmem:[%s269_s8 + $0x10] sm:$0xff]  ;;  %v309_v16 = vld [vmem:[%s269_s8 + $0x18] sm:$0xff]  ;;  %v319_v22 = vmul.f32 %v423_v2, %v307_v14 }
  0x11   : > { %v318_v17 = vmul.f32 %v423_v2, %v306_v11  ;;  %v301_v18 = vadd.f32 %v422_v1, %v289_v8  ;;  %v302_v19 = vadd.f32 %v422_v1, %v290_v9  ;;  %v303_v20 = vadd.f32 %v422_v1, %v291_v10  ;;  %v310_v21 = vld [vmem:[%s269_s8 + $0x20] sm:$0xff] }
  0x12   : > { %v304_v23 = vadd.f32 %v422_v1, %v292_v12  ;;  %v305_v24 = vadd.f32 %v422_v1, %v293_v13  ;;  %v320_v25 = vmul.f32 %v423_v2, %v308_v15  ;;  %v321_v26 = vmul.f32 %v423_v2, %v309_v16  ;;  %v424_v27 = vld [vmem:[%s520_s5] ss:$0 sm:$0xff] }
  0x13   : > { %v322_v28 = vmul.f32 %v423_v2, %v310_v21  ;;  %v323_v29 = vadd.f32 %v318_v17, %v301_v18  ;;  %v324_v30 = vadd.f32 %v319_v22, %v302_v19 }
  0x14   : > { %v325_v31 = vadd.f32 %v320_v25, %v303_v20  ;;  %v326_v32 = vadd.f32 %v321_v26, %v304_v23 }
  0x15   : > { %v327_v33 = vadd.f32 %v322_v28, %v305_v24  ;;  %v335_v34 = vadd.f32 %v424_v27, %v323_v29  ;;  %v336_v35 = vadd.f32 %v424_v27, %v324_v30 }
  0x16   : > { %v337_v36 = vadd.f32 %v424_v27, %v325_v31  ;;  %v338_v37 = vadd.f32 %v424_v27, %v326_v32 }
  0x17   : > { %340 = vst [vmem:[%s275_s17] sm:$0xff] %v335_v34  ;;  %341 = vst [vmem:[%s275_s17 + $0x8] sm:$0xff] %v336_v35  ;;  %v339_v38 = vadd.f32 %v424_v27, %v327_v33 }
  0x18   : > { %342 = vst [vmem:[%s275_s17 + $0x10] sm:$0xff] %v337_v36  ;;  %343 = vst [vmem:[%s275_s17 + $0x18] sm:$0xff] %v338_v37 }
  0x19   : > { %344 = vst [vmem:[%s275_s17 + $0x20] sm:$0xff] %v339_v38 }
  0x1a PF: > { %s16_s21 = sadd.s32 1, %s441_s21  }
  0x1b   : > { %p13_p4 = scmp.ge.s32.totalorder %s16_s21, 6  }
  0x1d   :  { %15 = sbr.rel (!%p13_p4) target bundleno = 1 (0x1), region = 77 }

</bundles_post_ra>
